<compile_context>
chip_gen: v6e
topology: v6e:2x2x1
jax: 0.10.0
libtpu: 0.0.40
codegen_flags: <defaults>
</compile_context>

<pallas_src>
import math
import functools

import jax
import jax.numpy as jnp
from jax.experimental import pallas as pl
from jax.experimental.pallas import tpu as pltpu

MATMUL_DTYPE = jnp.bfloat16   # MXU operand dtype; accumulation stays float32


# -----------------------------------------------------------------------------
# Small helpers
# -----------------------------------------------------------------------------
def _layer_norm(z, gamma, beta):
    mu = jnp.mean(z, axis=-1, keepdims=True)
    var = jnp.mean((z - mu) ** 2, axis=-1, keepdims=True)
    return (z - mu) * jax.lax.rsqrt(var + 1e-5) * gamma + beta


def _to_heads(t2d, num_heads, head_dim):
    """(N, H*Dh) -> (H, N, Dh).  einshape relayout when available; concat fallback."""
    n = t2d.shape[0]
    if hasattr(pltpu, "einshape"):
        return pltpu.einshape("nhd->hnd", t2d.reshape(n, num_heads, head_dim))
    return jnp.concatenate(
        [t2d[:, h * head_dim:(h + 1) * head_dim][None] for h in range(num_heads)],
        axis=0)


def _from_heads(t3d):
    """(H, N, Dh) -> (N, H*Dh)."""
    h, n, dh = t3d.shape
    if hasattr(pltpu, "einshape"):
        return pltpu.einshape("hnd->nhd", t3d).reshape(n, h * dh)
    return jnp.concatenate([t3d[i] for i in range(h)], axis=-1)


# -----------------------------------------------------------------------------
# Fused encoder kernel: one grid step == one (batch tile, layer) pair
# -----------------------------------------------------------------------------
def encoder_kernel(valid_ref,                      # SMEM (B,) int32  [scalar prefetch]
                   x0_ref,                         # (BT, S, D) f32
                   wqkv_ref,                       # (1, D, 3*H*Dh) bf16  (q-cols pre-scaled)
                   wo_ref,                         # (1, H*Dh, D) bf16
                   ln1g_ref, ln1b_ref,             # (1, 1, D) f32
                   w1_ref, b1_ref,                 # (1, D, F) bf16 / (1, 1, F) f32
                   w2_ref, b2_ref,                 # (1, F, D) bf16 / (1, 1, D) f32
                   ln2g_ref, ln2b_ref,             # (1, 1, D) f32
                   out_ref,                        # (BT, S, D) f32 -- carries the activation
                   *, num_heads):
    bt, s, d = out_ref.shape
    hdh = wqkv_ref.shape[2] // 3                   # H * Dh
    head_dim = hdh // num_heads
    n = bt * s                                     # rows fed to every matmul
    cdt = MATMUL_DTYPE

    # Layer 0: seed the resident output block from the embedded + pos-encoded input.
    @pl.when(pl.program_id(1) == 0)
    def _():
        out_ref[...] = x0_ref[...]

    x2d = out_ref[...].reshape(n, d)               # carried activation, (B*S, D) f32

    # ---- Fused Q/K/V projection: one (N,32)@(32,384) matmul (scale folded in W_q) --
    qkv = jnp.dot(x2d.astype(cdt), wqkv_ref[0],
                  preferred_element_type=jnp.float32)          # (N, 3*H*Dh) f32
    qh = _to_heads(qkv[:, :hdh], num_heads, head_dim).astype(cdt)        # (H, N, Dh)
    kh = _to_heads(qkv[:, hdh:2 * hdh], num_heads, head_dim).astype(cdt)
    vh = _to_heads(qkv[:, 2 * hdh:], num_heads, head_dim).astype(cdt)

    # ---- Scores over the folded batch (leading-batch-dim einsum -> MXU) ----
    scores = jnp.einsum('hqe,hke->hqk', qh, kh,
                        preferred_element_type=jnp.float32)    # (H, N, N) f32

    # Block-diagonal + valid-length mask built in-kernel from SMEM scalars:
    # a key is attendable iff it belongs to the same batch element as the query
    # AND its in-sequence position < valid_len of that element.  Masked scores get
    # -1e6 exactly like the reference masked_softmax (exp underflows to 0).
    q_idx = jax.lax.broadcasted_iota(jnp.int32, (n, n), 0)
    k_idx = jax.lax.broadcasted_iota(jnp.int32, (n, n), 1)
    base = pl.program_id(0) * bt
    mask = None
    for b in range(bt):                            # static, tiny (BT == B here)
        vlen = valid_ref[base + b]                 # scalar int32 from SMEM
        rows = (q_idx >= b * s) & (q_idx < (b + 1) * s)
        cols = (k_idx >= b * s) & (k_idx < b * s + vlen)
        blk = rows & cols
        mask = blk if mask is None else (mask | blk)
    scores = jnp.where(mask[None], scores, -1000000.0)

    # ---- Softmax (f32 element-wise math; reciprocal on the EUP) ----
    scores = scores - jnp.max(scores, axis=-1, keepdims=True)
    p = jnp.exp(scores)
    p = p * pl.reciprocal(jnp.sum(p, axis=-1, keepdims=True), approx=True)

    # ---- Context + single 128-lane output projection ----
    ctx = jnp.einsum('hqk,hke->hqe', p.astype(cdt), vh,
                     preferred_element_type=jnp.float32)       # (H, N, Dh) f32
    att = jnp.dot(_from_heads(ctx).astype(cdt), wo_ref[0],
                  preferred_element_type=jnp.float32)          # (N, D) f32

    # ---- AddNorm 1 (dropout == identity at p=0) ----
    y = _layer_norm(x2d + att, ln1g_ref[0], ln1b_ref[0])

    # ---- Position-wise FFN ----
    h1 = jnp.dot(y.astype(cdt), w1_ref[0],
                 preferred_element_type=jnp.float32) + b1_ref[0]
    h1 = jnp.maximum(h1, 0.0)
    ff = jnp.dot(h1.astype(cdt), w2_ref[0],
                 preferred_element_type=jnp.float32) + b2_ref[0]

    # ---- AddNorm 2 + carry ----
    z = _layer_norm(y + ff, ln2g_ref[0], ln2b_ref[0])
    out_ref[...] = z.reshape(bt, s, d)             # VMEM-resident carry; flushed once


# -----------------------------------------------------------------------------
# Wrapper: embedding + positional encoding (plain-JAX glue) + fused pallas_call
# -----------------------------------------------------------------------------
def positional_encoding(S, D):
    pos = jnp.arange(S, dtype=jnp.float32)[:, None]
    div = jnp.power(10000.0, jnp.arange(0, D, 2, dtype=jnp.float32) / D)
    X = pos / div
    P = jnp.zeros((S, D), jnp.float32)
    P = P.at[:, 0::2].set(jnp.sin(X))
    P = P.at[:, 1::2].set(jnp.cos(X))
    return P[None]                                   # (1, S, D)


def transformer_encoder_forward(params, tokens, valid_lens, *, num_heads,
                                batch_block=None):
    embed = params['embedding']                      # (V, D) f32
    B, S = tokens.shape
    D = embed.shape[1]
    L, _, hdh = params['wq'].shape                   # hdh = num_heads * head_dim
    head_dim = hdh // num_heads
    F = params['ffn_w1'].shape[2]

    BT = B if batch_block is None else batch_block   # v7x megacore: set to B//2
    assert B % BT == 0
    num_bt = B // BT

    # TODO(synk): embedding gather + positional-encoding table stay in plain JAX
    # (cheap glue); everything downstream runs inside the single fused kernel.
    x0 = jnp.take(embed, tokens, axis=0) * math.sqrt(D) + positional_encoding(S, D)
    x0 = x0.astype(jnp.float32)
    valid_i32 = valid_lens.astype(jnp.int32)

    # Fuse QKV weights (one wide matmul per layer) and fold the 1/sqrt(d) score
    # scale into the W_q columns; cast MXU operands to bf16.
    scale = 1.0 / math.sqrt(head_dim)
    wqkv = jnp.concatenate([params['wq'] * scale, params['wk'], params['wv']],
                           axis=-1).astype(MATMUL_DTYPE)       # (L, D, 3*H*Dh)
    wo = params['wo'].astype(MATMUL_DTYPE)
    w1 = params['ffn_w1'].astype(MATMUL_DTYPE)
    w2 = params['ffn_w2'].astype(MATMUL_DTYPE)

    # index_maps receive (bt, l, valid_ref) because of scalar prefetch.
    x_spec = pl.BlockSpec((BT, S, D), lambda bt, l, v: (bt, 0, 0))

    def wspec(arr):
        return pl.BlockSpec((1,) + arr.shape[1:], lambda bt, l, v: (l, 0, 0))

    in_specs = [x_spec,
                wspec(wqkv), wspec(wo),
                wspec(params['ln1_g']), wspec(params['ln1_b']),
                wspec(w1), wspec(params['ffn_b1']),
                wspec(w2), wspec(params['ffn_b2']),
                wspec(params['ln2_g']), wspec(params['ln2_b'])]

    # Advisory cost hint so XLA schedules surrounding glue ops around the call.
    flops = int(L * B * S * (2 * D * 3 * hdh      # fused QKV projection
                             + 4 * S * hdh        # scores + context
                             + 2 * hdh * D        # output projection
                             + 4 * D * F))        # FFN
    transcendentals = int(L * B * num_heads * S * S)
    weight_bytes = int((wqkv.size + wo.size + w1.size + w2.size) * 2
                       + (params['ln1_g'].size + params['ln1_b'].size
                          + params['ffn_b1'].size + params['ffn_b2'].size
                          + params['ln2_g'].size + params['ln2_b'].size) * 4)
    bytes_accessed = int(2 * B * S * D * 4 + num_bt * weight_bytes)
    cost = (pl.CostEstimate(flops=flops, transcendentals=transcendentals,
                            bytes_accessed=bytes_accessed)
            if hasattr(pl, "CostEstimate") else None)

    kern = functools.partial(encoder_kernel, num_heads=num_heads)
    return pl.pallas_call(
        kern,
        out_shape=jax.ShapeDtypeStruct((B, S, D), jnp.float32),
        grid_spec=pltpu.PrefetchScalarGridSpec(
            num_scalar_prefetch=1,
            grid=(num_bt, L),
            in_specs=in_specs,
            out_specs=x_spec),                       # resident across l -> carries act
        compiler_params=pltpu.CompilerParams(
            dimension_semantics=("parallel", "arbitrary")),
        cost_estimate=cost,
    )(valid_i32, x0,
      wqkv, wo,
      params['ln1_g'], params['ln1_b'],
      w1, params['ffn_b1'], w2, params['ffn_b2'],
      params['ln2_g'], params['ln2_b'])


# -----------------------------------------------------------------------------
# Deterministic parameter construction (f32 master weights, stacked over layers)
# -----------------------------------------------------------------------------
def init_params(key, vocab, D, heads, F, L):
    keys = jax.random.split(key, 8)

    def lin(k, shape, scale=0.1):
        return jax.random.normal(k, shape, jnp.float32) * scale

    return dict(
        embedding=jax.random.normal(keys[0], (vocab, D), jnp.float32),
        wq=lin(keys[1], (L, D, D * heads)),
        wk=lin(keys[2], (L, D, D * heads)),
        wv=lin(keys[3], (L, D, D * heads)),
        wo=lin(keys[4], (L, D * heads, D)),
        ln1_g=jnp.ones((L, 1, D), jnp.float32),
        ln1_b=jnp.zeros((L, 1, D), jnp.float32),
        ffn_w1=lin(keys[5], (L, D, F)),
        ffn_b1=jnp.zeros((L, 1, F), jnp.float32),
        ffn_w2=lin(keys[6], (L, F, D)),
        ffn_b2=jnp.zeros((L, 1, D), jnp.float32),
        ln2_g=jnp.ones((L, 1, D), jnp.float32),
        ln2_b=jnp.zeros((L, 1, D), jnp.float32),
    )


# -----------------------------------------------------------------------------
# Main
# -----------------------------------------------------------------------------
if __name__ == "__main__":
    B, S = 2, 8
    D = 32                  # num_hiddens (norm_shape = [32])
    heads = 4               # per-head dim = num_hiddens = 32 (d2l variant)
    F = 64                  # ffn_num_hiddens
    L = 2                   # num_layers
    V = 40                  # vocab_size
    # dropout = 0.0 -> nn.Dropout is the identity (deterministic)

    key = jax.random.PRNGKey(0)
    kp, kt = jax.random.split(key)
    params = init_params(kp, V, D, heads, F, L)
    tokens = jax.random.randint(kt, (B, S), 0, V, dtype=jnp.int32)
    valid_lens = jnp.array([6, 8], jnp.int32)

    fwd = jax.jit(functools.partial(transformer_encoder_forward, num_heads=heads))
    out = jax.block_until_ready(fwd(params, tokens, valid_lens))

    assert out.shape == (B, S, D)
    assert bool(jnp.all(jnp.isfinite(out)))
    print("KERNEL_OK")
</pallas_src>

<mosaic_0001>
module attributes {stable_mosaic.version = 11 : i64} {
  func.func @encoder_kernel(%arg0: i32, %arg1: i32, %arg2: memref<2xi32, #tpu.memory_space<smem>>, %arg3: memref<2x8x32xf32, #tpu.memory_space<vmem>>, %arg4: memref<1x32x384xbf16, #tpu.memory_space<vmem>>, %arg5: memref<1x128x32xbf16, #tpu.memory_space<vmem>>, %arg6: memref<1x1x32xf32, #tpu.memory_space<vmem>>, %arg7: memref<1x1x32xf32, #tpu.memory_space<vmem>>, %arg8: memref<1x32x64xbf16, #tpu.memory_space<vmem>>, %arg9: memref<1x1x64xf32, #tpu.memory_space<vmem>>, %arg10: memref<1x64x32xbf16, #tpu.memory_space<vmem>>, %arg11: memref<1x1x32xf32, #tpu.memory_space<vmem>>, %arg12: memref<1x1x32xf32, #tpu.memory_space<vmem>>, %arg13: memref<1x1x32xf32, #tpu.memory_space<vmem>>, %arg14: memref<2x8x32xf32, #tpu.memory_space<vmem>>) attributes {dimension_semantics = [#tpu.dimension_semantics<parallel>, #tpu.dimension_semantics<arbitrary>], iteration_bounds = array<i64: 1, 2>, scalar_prefetch = 1 : i64, scratch_operands = 0 : i64, tpu.core_type = #tpu.core_type<tc>, window_params = [{transform_indices = @transform_0, window_bounds = array<i64: 2, 8, 32>}, {transform_indices = @transform_1, window_bounds = array<i64: 1, 32, 384>}, {transform_indices = @transform_2, window_bounds = array<i64: 1, 128, 32>}, {transform_indices = @transform_3, window_bounds = array<i64: 1, 1, 32>}, {transform_indices = @transform_4, window_bounds = array<i64: 1, 1, 32>}, {transform_indices = @transform_5, window_bounds = array<i64: 1, 32, 64>}, {transform_indices = @transform_6, window_bounds = array<i64: 1, 1, 64>}, {transform_indices = @transform_7, window_bounds = array<i64: 1, 64, 32>}, {transform_indices = @transform_8, window_bounds = array<i64: 1, 1, 32>}, {transform_indices = @transform_9, window_bounds = array<i64: 1, 1, 32>}, {transform_indices = @transform_10, window_bounds = array<i64: 1, 1, 32>}, {transform_indices = @transform_11, window_bounds = array<i64: 2, 8, 32>}]} {
    %c0_i32 = arith.constant 0 : i32
    %0 = arith.cmpi eq, %arg1, %c0_i32 : i32
    %1 = arith.extui %0 : i1 to i32
    %c0_i32_0 = arith.constant 0 : i32
    %2 = arith.cmpi ne, %1, %c0_i32_0 : i32
    scf.if %2 {
      %c0_62 = arith.constant 0 : index
      %c0_63 = arith.constant 0 : index
      %c0_64 = arith.constant 0 : index
      %153 = vector.load %arg3[%c0_62, %c0_63, %c0_64] : memref<2x8x32xf32, #tpu.memory_space<vmem>>, vector<2x8x32xf32>
      %c0_65 = arith.constant 0 : index
      %c0_66 = arith.constant 0 : index
      %c0_67 = arith.constant 0 : index
      %154 = vector.load %arg14[%c0_65, %c0_66, %c0_67] : memref<2x8x32xf32, #tpu.memory_space<vmem>>, vector<2x8x32xf32>
      tpu.vector_store %arg14[%c0_65, %c0_66, %c0_67], %153 {strides = array<i32>} : memref<2x8x32xf32, #tpu.memory_space<vmem>>, vector<2x8x32xf32>,
    } else {
    }
    %c0 = arith.constant 0 : index
    %c0_1 = arith.constant 0 : index
    %c0_2 = arith.constant 0 : index
    %3 = vector.load %arg14[%c0, %c0_1, %c0_2] : memref<2x8x32xf32, #tpu.memory_space<vmem>>, vector<2x8x32xf32>
    %4 = vector.shape_cast %3 : vector<2x8x32xf32> to vector<16x32xf32>
    %5 = arith.truncf %4 : vector<16x32xf32> to vector<16x32xbf16>
    %c0_3 = arith.constant 0 : index
    %c0_4 = arith.constant 0 : index
    %c0_5 = arith.constant 0 : index
    %6 = vector.load %arg4[%c0_3, %c0_4, %c0_5] : memref<1x32x384xbf16, #tpu.memory_space<vmem>>, vector<1x32x384xbf16>
    %7 = vector.shape_cast %6 : vector<1x32x384xbf16> to vector<32x384xbf16>
    %cst = arith.constant dense<0.000000e+00> : vector<16x384xf32>
    %8 = tpu.matmul %5, %7, %cst {dimension_numbers = #tpu.dot_dimension_numbers<[1], [0], [0], [1], [0, 0, 1, 1], [], []>} : vector<16x32xbf16>, vector<32x384xbf16>, vector<16x384xf32> -> vector<16x384xf32>
    %9 = vector.extract_strided_slice %8 {offsets = [0, 0], sizes = [16, 128], strides = [1, 1]} : vector<16x384xf32> to vector<16x128xf32>
    %10 = vector.shape_cast %9 : vector<16x128xf32> to vector<16x4x32xf32>
    %11 = tpu.transpose %10, [1, 0, 2] : vector<16x4x32xf32> -> vector<4x16x32xf32>
    %12 = arith.truncf %11 : vector<4x16x32xf32> to vector<4x16x32xbf16>
    %13 = vector.extract_strided_slice %8 {offsets = [0, 128], sizes = [16, 128], strides = [1, 1]} : vector<16x384xf32> to vector<16x128xf32>
    %14 = vector.shape_cast %13 : vector<16x128xf32> to vector<16x4x32xf32>
    %15 = tpu.transpose %14, [1, 0, 2] : vector<16x4x32xf32> -> vector<4x16x32xf32>
    %16 = arith.truncf %15 : vector<4x16x32xf32> to vector<4x16x32xbf16>
    %17 = vector.extract_strided_slice %8 {offsets = [0, 256], sizes = [16, 128], strides = [1, 1]} : vector<16x384xf32> to vector<16x128xf32>
    %18 = vector.shape_cast %17 : vector<16x128xf32> to vector<16x4x32xf32>
    %19 = tpu.transpose %18, [1, 0, 2] : vector<16x4x32xf32> -> vector<4x16x32xf32>
    %20 = arith.truncf %19 : vector<4x16x32xf32> to vector<4x16x32xbf16>
    "tpu.trace_start"() <{level = 10 : i32, message = "hqe,hke->hqk"}> : () -> ()
    %cst_6 = arith.constant dense<0.000000e+00> : vector<4x16x16xf32>
    %21 = tpu.matmul %12, %16, %cst_6 {dimension_numbers = #tpu.dot_dimension_numbers<[2], [2], [1], [1], [0, 0, 0, 1, 1, 1], [0], [0]>} : vector<4x16x32xbf16>, vector<4x16x32xbf16>, vector<4x16x16xf32> -> vector<4x16x16xf32>
    "tpu.trace_stop"() : () -> ()
    %22 = tpu.iota {dimensions = array<i32: 0>} : vector<16x16xi32>
    %23 = tpu.iota {dimensions = array<i32: 1>} : vector<16x16xi32>
    %c2_i32 = arith.constant 2 : i32
    %24 = arith.muli %arg0, %c2_i32 : i32
    %c0_i32_7 = arith.constant 0 : i32
    %25 = arith.addi %24, %c0_i32_7 : i32
    %26 = arith.index_cast %25 : i32 to index
    %27 = memref.load %arg2[%26] : memref<2xi32, #tpu.memory_space<smem>>
    %c0_i32_8 = arith.constant 0 : i32
    %28 = vector.broadcast %c0_i32_8 : i32 to vector<16x16xi32>
    %29 = arith.cmpi sge, %22, %28 : vector<16x16xi32>
    %c8_i32 = arith.constant 8 : i32
    %30 = vector.broadcast %c8_i32 : i32 to vector<16x16xi32>
    %31 = arith.cmpi slt, %22, %30 : vector<16x16xi32>
    %32 = arith.andi %29, %31 : vector<16x16xi1>
    %c0_i32_9 = arith.constant 0 : i32
    %33 = vector.broadcast %c0_i32_9 : i32 to vector<16x16xi32>
    %34 = arith.cmpi sge, %23, %33 : vector<16x16xi32>
    %c0_i32_10 = arith.constant 0 : i32
    %35 = arith.addi %c0_i32_10, %27 : i32
    %36 = vector.broadcast %35 : i32 to vector<16x16xi32>
    %37 = arith.cmpi slt, %23, %36 : vector<16x16xi32>
    %38 = arith.andi %34, %37 : vector<16x16xi1>
    %39 = arith.andi %32, %38 : vector<16x16xi1>
    %c1_i32 = arith.constant 1 : i32
    %40 = arith.addi %24, %c1_i32 : i32
    %41 = arith.index_cast %40 : i32 to index
    %42 = memref.load %arg2[%41] : memref<2xi32, #tpu.memory_space<smem>>
    %c8_i32_11 = arith.constant 8 : i32
    %43 = vector.broadcast %c8_i32_11 : i32 to vector<16x16xi32>
    %44 = arith.cmpi sge, %22, %43 : vector<16x16xi32>
    %c16_i32 = arith.constant 16 : i32
    %45 = vector.broadcast %c16_i32 : i32 to vector<16x16xi32>
    %46 = arith.cmpi slt, %22, %45 : vector<16x16xi32>
    %47 = arith.andi %44, %46 : vector<16x16xi1>
    %c8_i32_12 = arith.constant 8 : i32
    %48 = vector.broadcast %c8_i32_12 : i32 to vector<16x16xi32>
    %49 = arith.cmpi sge, %23, %48 : vector<16x16xi32>
    %c8_i32_13 = arith.constant 8 : i32
    %50 = arith.addi %c8_i32_13, %42 : i32
    %51 = vector.broadcast %50 : i32 to vector<16x16xi32>
    %52 = arith.cmpi slt, %23, %51 : vector<16x16xi32>
    %53 = arith.andi %49, %52 : vector<16x16xi1>
    %54 = arith.andi %47, %53 : vector<16x16xi1>
    %55 = arith.ori %39, %54 : vector<16x16xi1>
    %56 = vector.shape_cast %55 : vector<16x16xi1> to vector<1x16x16xi1>
    %cst_14 = arith.constant -1.000000e+06 : f32
    %57 = vector.shape_cast %56 : vector<1x16x16xi1> to vector<1x16x16xi1>
    %58 = vector.broadcast %57 : vector<1x16x16xi1> to vector<4x16x16xi1>
    %59 = vector.broadcast %cst_14 : f32 to vector<4x16x16xf32>
    %60 = arith.select %58, %21, %59 : vector<4x16x16xi1>, vector<4x16x16xf32>
    %cst_15 = arith.constant dense<0xFF800000> : vector<4x16xf32>
    %61 = vector.multi_reduction <maximumf>, %60, %cst_15 [2] : vector<4x16x16xf32> to vector<4x16xf32>
    %62 = vector.shape_cast %61 : vector<4x16xf32> to vector<4x16x1xf32>
    %63 = vector.broadcast %62 : vector<4x16x1xf32> to vector<4x16x16xf32>
    %64 = arith.subf %60, %63 : vector<4x16x16xf32>
    %65 = math.exp %64 : vector<4x16x16xf32>
    %cst_16 = arith.constant dense<0.000000e+00> : vector<4x16xf32>
    %66 = vector.multi_reduction <add>, %65, %cst_16 [2] : vector<4x16x16xf32> to vector<4x16xf32>
    %67 = vector.shape_cast %66 : vector<4x16xf32> to vector<4x16x1xf32>
    %68 = tpu.reciprocal %67 {approx = true} : vector<4x16x1xf32> -> vector<4x16x1xf32>
    %69 = vector.broadcast %68 : vector<4x16x1xf32> to vector<4x16x16xf32>
    %70 = arith.mulf %65, %69 : vector<4x16x16xf32>
    %71 = arith.truncf %70 : vector<4x16x16xf32> to vector<4x16x16xbf16>
    "tpu.trace_start"() <{level = 10 : i32, message = "hqk,hke->hqe"}> : () -> ()
    %cst_17 = arith.constant dense<0.000000e+00> : vector<4x16x32xf32>
    %72 = tpu.matmul %71, %20, %cst_17 {dimension_numbers = #tpu.dot_dimension_numbers<[2], [1], [1], [2], [0, 0, 0, 1, 1, 2], [0], [0]>} : vector<4x16x16xbf16>, vector<4x16x32xbf16>, vector<4x16x32xf32> -> vector<4x16x32xf32>
    "tpu.trace_stop"() : () -> ()
    %73 = tpu.transpose %72, [1, 0, 2] : vector<4x16x32xf32> -> vector<16x4x32xf32>
    %74 = vector.shape_cast %73 : vector<16x4x32xf32> to vector<16x128xf32>
    %75 = arith.truncf %74 : vector<16x128xf32> to vector<16x128xbf16>
    %c0_18 = arith.constant 0 : index
    %c0_19 = arith.constant 0 : index
    %c0_20 = arith.constant 0 : index
    %76 = vector.load %arg5[%c0_18, %c0_19, %c0_20] : memref<1x128x32xbf16, #tpu.memory_space<vmem>>, vector<1x128x32xbf16>
    %77 = vector.shape_cast %76 : vector<1x128x32xbf16> to vector<128x32xbf16>
    %cst_21 = arith.constant dense<0.000000e+00> : vector<16x32xf32>
    %78 = tpu.matmul %75, %77, %cst_21 {dimension_numbers = #tpu.dot_dimension_numbers<[1], [0], [0], [1], [0, 0, 1, 1], [], []>} : vector<16x128xbf16>, vector<128x32xbf16>, vector<16x32xf32> -> vector<16x32xf32>
    %79 = arith.addf %4, %78 : vector<16x32xf32>
    %c0_22 = arith.constant 0 : index
    %c0_23 = arith.constant 0 : index
    %c0_24 = arith.constant 0 : index
    %80 = vector.load %arg6[%c0_22, %c0_23, %c0_24] : memref<1x1x32xf32, #tpu.memory_space<vmem>>, vector<1x1x32xf32>
    %81 = vector.shape_cast %80 : vector<1x1x32xf32> to vector<1x32xf32>
    %c0_25 = arith.constant 0 : index
    %c0_26 = arith.constant 0 : index
    %c0_27 = arith.constant 0 : index
    %82 = vector.load %arg7[%c0_25, %c0_26, %c0_27] : memref<1x1x32xf32, #tpu.memory_space<vmem>>, vector<1x1x32xf32>
    %83 = vector.shape_cast %82 : vector<1x1x32xf32> to vector<1x32xf32>
    %cst_28 = arith.constant dense<0.000000e+00> : vector<16xf32>
    %84 = vector.multi_reduction <add>, %79, %cst_28 [1] : vector<16x32xf32> to vector<16xf32>
    %85 = vector.shape_cast %84 : vector<16xf32> to vector<16x1xf32>
    %cst_29 = arith.constant 3.200000e+01 : f32
    %86 = vector.broadcast %cst_29 : f32 to vector<16x1xf32>
    %87 = arith.divf %85, %86 : vector<16x1xf32>
    %88 = vector.broadcast %87 : vector<16x1xf32> to vector<16x32xf32>
    %89 = arith.subf %79, %88 : vector<16x32xf32>
    %90 = arith.mulf %89, %89 : vector<16x32xf32>
    %cst_30 = arith.constant dense<0.000000e+00> : vector<16xf32>
    %91 = vector.multi_reduction <add>, %90, %cst_30 [1] : vector<16x32xf32> to vector<16xf32>
    %92 = vector.shape_cast %91 : vector<16xf32> to vector<16x1xf32>
    %cst_31 = arith.constant 3.200000e+01 : f32
    %93 = vector.broadcast %cst_31 : f32 to vector<16x1xf32>
    %94 = arith.divf %92, %93 : vector<16x1xf32>
    %95 = vector.broadcast %87 : vector<16x1xf32> to vector<16x32xf32>
    %96 = arith.subf %79, %95 : vector<16x32xf32>
    %cst_32 = arith.constant 9.99999974E-6 : f32
    %97 = vector.broadcast %cst_32 : f32 to vector<16x1xf32>
    %98 = arith.addf %94, %97 : vector<16x1xf32>
    %99 = math.rsqrt %98 : vector<16x1xf32>
    %100 = vector.broadcast %99 : vector<16x1xf32> to vector<16x32xf32>
    %101 = arith.mulf %96, %100 : vector<16x32xf32>
    %102 = vector.broadcast %81 : vector<1x32xf32> to vector<16x32xf32>
    %103 = arith.mulf %101, %102 : vector<16x32xf32>
    %104 = vector.broadcast %83 : vector<1x32xf32> to vector<16x32xf32>
    %105 = arith.addf %103, %104 : vector<16x32xf32>
    %106 = arith.truncf %105 : vector<16x32xf32> to vector<16x32xbf16>
    %c0_33 = arith.constant 0 : index
    %c0_34 = arith.constant 0 : index
    %c0_35 = arith.constant 0 : index
    %107 = vector.load %arg8[%c0_33, %c0_34, %c0_35] : memref<1x32x64xbf16, #tpu.memory_space<vmem>>, vector<1x32x64xbf16>
    %108 = vector.shape_cast %107 : vector<1x32x64xbf16> to vector<32x64xbf16>
    %cst_36 = arith.constant dense<0.000000e+00> : vector<16x64xf32>
    %109 = tpu.matmul %106, %108, %cst_36 {dimension_numbers = #tpu.dot_dimension_numbers<[1], [0], [0], [1], [0, 0, 1, 1], [], []>} : vector<16x32xbf16>, vector<32x64xbf16>, vector<16x64xf32> -> vector<16x64xf32>
    %c0_37 = arith.constant 0 : index
    %c0_38 = arith.constant 0 : index
    %c0_39 = arith.constant 0 : index
    %110 = vector.load %arg9[%c0_37, %c0_38, %c0_39] : memref<1x1x64xf32, #tpu.memory_space<vmem>>, vector<1x1x64xf32>
    %111 = vector.shape_cast %110 : vector<1x1x64xf32> to vector<1x64xf32>
    %112 = vector.broadcast %111 : vector<1x64xf32> to vector<16x64xf32>
    %113 = arith.addf %109, %112 : vector<16x64xf32>
    %cst_40 = arith.constant 0.000000e+00 : f32
    %114 = vector.broadcast %cst_40 : f32 to vector<16x64xf32>
    %115 = arith.maximumf %113, %114 : vector<16x64xf32>
    %116 = arith.truncf %115 : vector<16x64xf32> to vector<16x64xbf16>
    %c0_41 = arith.constant 0 : index
    %c0_42 = arith.constant 0 : index
    %c0_43 = arith.constant 0 : index
    %117 = vector.load %arg10[%c0_41, %c0_42, %c0_43] : memref<1x64x32xbf16, #tpu.memory_space<vmem>>, vector<1x64x32xbf16>
    %118 = vector.shape_cast %117 : vector<1x64x32xbf16> to vector<64x32xbf16>
    %cst_44 = arith.constant dense<0.000000e+00> : vector<16x32xf32>
    %119 = tpu.matmul %116, %118, %cst_44 {dimension_numbers = #tpu.dot_dimension_numbers<[1], [0], [0], [1], [0, 0, 1, 1], [], []>} : vector<16x64xbf16>, vector<64x32xbf16>, vector<16x32xf32> -> vector<16x32xf32>
    %c0_45 = arith.constant 0 : index
    %c0_46 = arith.constant 0 : index
    %c0_47 = arith.constant 0 : index
    %120 = vector.load %arg11[%c0_45, %c0_46, %c0_47] : memref<1x1x32xf32, #tpu.memory_space<vmem>>, vector<1x1x32xf32>
    %121 = vector.shape_cast %120 : vector<1x1x32xf32> to vector<1x32xf32>
    %122 = vector.broadcast %121 : vector<1x32xf32> to vector<16x32xf32>
    %123 = arith.addf %119, %122 : vector<16x32xf32>
    %124 = arith.addf %105, %123 : vector<16x32xf32>
    %c0_48 = arith.constant 0 : index
    %c0_49 = arith.constant 0 : index
    %c0_50 = arith.constant 0 : index
    %125 = vector.load %arg12[%c0_48, %c0_49, %c0_50] : memref<1x1x32xf32, #tpu.memory_space<vmem>>, vector<1x1x32xf32>
    %126 = vector.shape_cast %125 : vector<1x1x32xf32> to vector<1x32xf32>
    %c0_51 = arith.constant 0 : index
    %c0_52 = arith.constant 0 : index
    %c0_53 = arith.constant 0 : index
    %127 = vector.load %arg13[%c0_51, %c0_52, %c0_53] : memref<1x1x32xf32, #tpu.memory_space<vmem>>, vector<1x1x32xf32>
    %128 = vector.shape_cast %127 : vector<1x1x32xf32> to vector<1x32xf32>
    %cst_54 = arith.constant dense<0.000000e+00> : vector<16xf32>
    %129 = vector.multi_reduction <add>, %124, %cst_54 [1] : vector<16x32xf32> to vector<16xf32>
    %130 = vector.shape_cast %129 : vector<16xf32> to vector<16x1xf32>
    %cst_55 = arith.constant 3.200000e+01 : f32
    %131 = vector.broadcast %cst_55 : f32 to vector<16x1xf32>
    %132 = arith.divf %130, %131 : vector<16x1xf32>
    %133 = vector.broadcast %132 : vector<16x1xf32> to vector<16x32xf32>
    %134 = arith.subf %124, %133 : vector<16x32xf32>
    %135 = arith.mulf %134, %134 : vector<16x32xf32>
    %cst_56 = arith.constant dense<0.000000e+00> : vector<16xf32>
    %136 = vector.multi_reduction <add>, %135, %cst_56 [1] : vector<16x32xf32> to vector<16xf32>
    %137 = vector.shape_cast %136 : vector<16xf32> to vector<16x1xf32>
    %cst_57 = arith.constant 3.200000e+01 : f32
    %138 = vector.broadcast %cst_57 : f32 to vector<16x1xf32>
    %139 = arith.divf %137, %138 : vector<16x1xf32>
    %140 = vector.broadcast %132 : vector<16x1xf32> to vector<16x32xf32>
    %141 = arith.subf %124, %140 : vector<16x32xf32>
    %cst_58 = arith.constant 9.99999974E-6 : f32
    %142 = vector.broadcast %cst_58 : f32 to vector<16x1xf32>
    %143 = arith.addf %139, %142 : vector<16x1xf32>
    %144 = math.rsqrt %143 : vector<16x1xf32>
    %145 = vector.broadcast %144 : vector<16x1xf32> to vector<16x32xf32>
    %146 = arith.mulf %141, %145 : vector<16x32xf32>
    %147 = vector.broadcast %126 : vector<1x32xf32> to vector<16x32xf32>
    %148 = arith.mulf %146, %147 : vector<16x32xf32>
    %149 = vector.broadcast %128 : vector<1x32xf32> to vector<16x32xf32>
    %150 = arith.addf %148, %149 : vector<16x32xf32>
    %151 = vector.shape_cast %150 : vector<16x32xf32> to vector<2x8x32xf32>
    %c0_59 = arith.constant 0 : index
    %c0_60 = arith.constant 0 : index
    %c0_61 = arith.constant 0 : index
    %152 = vector.load %arg14[%c0_59, %c0_60, %c0_61] : memref<2x8x32xf32, #tpu.memory_space<vmem>>, vector<2x8x32xf32>
    tpu.vector_store %arg14[%c0_59, %c0_60, %c0_61], %151 {strides = array<i32>} : memref<2x8x32xf32, #tpu.memory_space<vmem>>, vector<2x8x32xf32>,
    return
  }
  func.func @transform_0(%arg0: i32, %arg1: i32, %arg2: memref<2xi32, #tpu.memory_space<smem>>) -> (i32, i32, i32) {
    %c0_i32 = arith.constant 0 : i32
    %c0_i32_0 = arith.constant 0 : i32
    %c0_i32_1 = arith.constant 0 : i32
    return %arg0, %c0_i32, %c0_i32_0 : i32, i32, i32
  }
  func.func @transform_1(%arg0: i32, %arg1: i32, %arg2: memref<2xi32, #tpu.memory_space<smem>>) -> (i32, i32, i32) {
    %c0_i32 = arith.constant 0 : i32
    %c0_i32_0 = arith.constant 0 : i32
    %c0_i32_1 = arith.constant 0 : i32
    return %arg1, %c0_i32, %c0_i32_0 : i32, i32, i32
  }
  func.func @transform_2(%arg0: i32, %arg1: i32, %arg2: memref<2xi32, #tpu.memory_space<smem>>) -> (i32, i32, i32) {
    %c0_i32 = arith.constant 0 : i32
    %c0_i32_0 = arith.constant 0 : i32
    %c0_i32_1 = arith.constant 0 : i32
    return %arg1, %c0_i32, %c0_i32_0 : i32, i32, i32
  }
  func.func @transform_3(%arg0: i32, %arg1: i32, %arg2: memref<2xi32, #tpu.memory_space<smem>>) -> (i32, i32, i32) {
    %c0_i32 = arith.constant 0 : i32
    %c0_i32_0 = arith.constant 0 : i32
    %c0_i32_1 = arith.constant 0 : i32
    return %arg1, %c0_i32, %c0_i32_0 : i32, i32, i32
  }
  func.func @transform_4(%arg0: i32, %arg1: i32, %arg2: memref<2xi32, #tpu.memory_space<smem>>) -> (i32, i32, i32) {
    %c0_i32 = arith.constant 0 : i32
    %c0_i32_0 = arith.constant 0 : i32
    %c0_i32_1 = arith.constant 0 : i32
    return %arg1, %c0_i32, %c0_i32_0 : i32, i32, i32
  }
  func.func @transform_5(%arg0: i32, %arg1: i32, %arg2: memref<2xi32, #tpu.memory_space<smem>>) -> (i32, i32, i32) {
    %c0_i32 = arith.constant 0 : i32
    %c0_i32_0 = arith.constant 0 : i32
    %c0_i32_1 = arith.constant 0 : i32
    return %arg1, %c0_i32, %c0_i32_0 : i32, i32, i32
  }
  func.func @transform_6(%arg0: i32, %arg1: i32, %arg2: memref<2xi32, #tpu.memory_space<smem>>) -> (i32, i32, i32) {
    %c0_i32 = arith.constant 0 : i32
    %c0_i32_0 = arith.constant 0 : i32
    %c0_i32_1 = arith.constant 0 : i32
    return %arg1, %c0_i32, %c0_i32_0 : i32, i32, i32
  }
  func.func @transform_7(%arg0: i32, %arg1: i32, %arg2: memref<2xi32, #tpu.memory_space<smem>>) -> (i32, i32, i32) {
    %c0_i32 = arith.constant 0 : i32
    %c0_i32_0 = arith.constant 0 : i32
    %c0_i32_1 = arith.constant 0 : i32
    return %arg1, %c0_i32, %c0_i32_0 : i32, i32, i32
  }
  func.func @transform_8(%arg0: i32, %arg1: i32, %arg2: memref<2xi32, #tpu.memory_space<smem>>) -> (i32, i32, i32) {
    %c0_i32 = arith.constant 0 : i32
    %c0_i32_0 = arith.constant 0 : i32
    %c0_i32_1 = arith.constant 0 : i32
    return %arg1, %c0_i32, %c0_i32_0 : i32, i32, i32
  }
  func.func @transform_9(%arg0: i32, %arg1: i32, %arg2: memref<2xi32, #tpu.memory_space<smem>>) -> (i32, i32, i32) {
    %c0_i32 = arith.constant 0 : i32
    %c0_i32_0 = arith.constant 0 : i32
    %c0_i32_1 = arith.constant 0 : i32
    return %arg1, %c0_i32, %c0_i32_0 : i32, i32, i32
  }
  func.func @transform_10(%arg0: i32, %arg1: i32, %arg2: memref<2xi32, #tpu.memory_space<smem>>) -> (i32, i32, i32) {
    %c0_i32 = arith.constant 0 : i32
    %c0_i32_0 = arith.constant 0 : i32
    %c0_i32_1 = arith.constant 0 : i32
    return %arg1, %c0_i32, %c0_i32_0 : i32, i32, i32
  }
  func.func @transform_11(%arg0: i32, %arg1: i32, %arg2: memref<2xi32, #tpu.memory_space<smem>>) -> (i32, i32, i32) {
    %c0_i32 = arith.constant 0 : i32
    %c0_i32_0 = arith.constant 0 : i32
    %c0_i32_1 = arith.constant 0 : i32
    return %arg0, %c0_i32, %c0_i32_0 : i32, i32, i32
  }
}

</mosaic_0001>

<bundles_post_ra>
// kernel: transformer_encoder_forward.1
= control target key start
LH: loop header
LB: loop body
LE: loop exit
PB: predicated region body
PF: predicated region fallthrough
CT: control target
= control target key end

     0   :  { %s3929_s0 = inlined_call_operand.vmem [shape: s32[2], index: 0, kind: input, shape index: {}]   ;;  %s3930_s1 = inlined_call_operand.vmem [shape: f32[2,8,32], index: 1, kind: input, shape index: {}]   ;;  %s3931_s2 = inlined_call_operand.vmem [shape: bf16[2,32,384], index: 2, kind: input, shape index: {}]   ;;  %s3932_s3 = inlined_call_operand.vmem [shape: bf16[2,128,32], index: 3, kind: input, shape index: {}]   ;;  %s3933_s4 = inlined_call_operand.vmem [shape: f32[2,1,32], index: 4, kind: input, shape index: {}]   ;;  %s3934_s5 = inlined_call_operand.vmem [shape: f32[2,1,32], index: 5, kind: input, shape index: {}]   ;;  %s3935_s6 = inlined_call_operand.vmem [shape: bf16[2,32,64], index: 6, kind: input, shape index: {}]   ;;  %s3936_s7 = inlined_call_operand.vmem [shape: f32[2,1,64], index: 7, kind: input, shape index: {}]   ;;  %s3937_s8 = inlined_call_operand.vmem [shape: bf16[2,64,32], index: 8, kind: input, shape index: {}]   ;;  %s3938_s9 = inlined_call_operand.vmem [shape: f32[2,1,32], index: 9, kind: input, shape index: {}]   ;;  %s3939_s10 = inlined_call_operand.vmem [shape: f32[2,1,32], index: 10, kind: input, shape index: {}]   ;;  %s3940_s11 = inlined_call_operand.vmem [shape: f32[2,1,32], index: 11, kind: input, shape index: {}]   ;;  %s3941_s12 = inlined_call_operand.hbm [shape: f32[2,8,32], index: 12, kind: output, shape index: {}]  }
   0x1   :  { %3943 = sst [smem:[#allocation10_spill]] %s3932_s3  ;;  %s17_s23 = sshll.u32 %s3929_s0, 4  ;;  %s18_s23 = int_to_ptr.vmem [resolvable:$true] %s17_s23 }
   0x2   :  { %3944 = sst [smem:[#allocation11_spill]] %s3941_s12  ;;  %s3253_s24 = scalar_lea.vmem %s18_s23, 16 }
   0x3   :  { %p3254_p0 = scmp.ne.s32.totalorder %s18_s23, %s3253_s24  ;;  %p3258_p1 = scmp.lt.s32.totalorder %s18_s23, %s18_s23 }
   0x4   :  { %p3259_p2 = scmp.lt.s32.totalorder %s3253_s24, %s3253_s24 }
   0x6   :  { %p3260_p3 = por %p3259_p2, %p3258_p1 }
   0x8   :  { %p3261_p4 = pnand %p3260_p3, %p3254_p0 }
   0xa   :  { %3264 = shalt.err (!%p3261_p4)  }
   0xb   :  { %s3319_s25 = smov [#allocation3]  }
   0xc   :  { %20 = dma.vmem_to_smem %s18_s23, 16, %s3319_s25, [#allocation2] }
   0xd   :  { %3301 = dma.done.wait [#allocation2], 16 }
   0xe   :  { %3302 = vsyncadd [#allocation2], 4294967280 }
   0xf   :  { %22 = sfence }
  0x10   :  { %23 = vsyncpa [#allocation5], 0  ;;  %s3399_s26 = smov 0   ;;  %s3401_s27 = smov 0  }
  0x11   :  { %s3403_s28 = smov 0  }
  0x12 LB: > { %3945 = sst [smem:[#allocation8_spill]] %s3313_s27  ;;  %s38_s29 = sadd.s32 1, %s3313_s27  ;;  %s3317_s28 = sphi %s3403_s28, %s29_s28   ;;  %s3313_s27 = sphi %s3401_s27, %s3959_s27   ;;  %s3309_s26 = sphi %s3399_s26, %s3958_s26  }
  0x13   : > { %p39_p5 = scmp.ge.s32.totalorder %s38_s29, 2  ;;  %p2928_p6 = scmp.ge.s32.totalorder %s3317_s28, 1 }
  0x14   : > { %p446_p7 = scmp.lt.s32.totalorder %s3317_s28, 3 }
  0x15   : > { %s3961_s29 = smov (%p39_p5, %s38_s29), 0 }
  0x16   : > { %3946 = sst [smem:[#allocation9_spill]] %s3961_s29  ;;  %p447_p8 = pnand %p2928_p6, %p446_p7 }
  0x17   : > { %p525_p9 = scmp.lt.s32.totalorder (!%p447_p8), %s3309_s26, 1  ;;  %s3947_s3 = sld [smem:[#allocation10_spill]] (!%p447_p8) }
  0x18   : > { %450 = sbr.rel (%p447_p8) target bundleno = 2551 (0x9f7), region = 64  ;;  %p2936_p10 = scmp.ne.s32.totalorder (!%p447_p8), %s3309_s26, 0 }
  0x1d   : > { %s3418_s30 = scalar_select %p525_p9, %s3309_s26, 1 }
  0x1f   : > { %s3131_s13 = smul.u32 48, %s3418_s30  ;;  %s2996_s14 = sshll.u32 %s3418_s30, 6 }
  0x20   : > { %s3425_s17 = scalar_lea.vmem %s3947_s3, %s2996_s14  ;;  %s2997_s29 = sshll.u32 %s3418_s30, 4 }
  0x21   : > { %s3434_s23 = scalar_lea.vmem %s3931_s2, %s3131_s13  ;;  %s3448_s3 = scalar_lea.vmem %s3935_s6, %s2997_s29 }
  0x22   : > { %s2998_s18 = sshll.u32 %s3418_s30, 5  ;;  %s556_s24 = scalar_lea.vmem %s3938_s9, %s3418_s30 }
  0x23   : > { %s3454_s13 = scalar_lea.vmem %s3937_s8, %s2998_s18  ;;  %s559_s12 = scalar_lea.vmem %s3939_s10, %s3418_s30 }
  0x24   : > { %s562_s14 = scalar_lea.vmem %s3940_s11, %s3418_s30  ;;  %568 = sbr.rel (%p2936_p10) target bundleno = 43 (0x2b), region = 68 }
  0x29   : > { %v569_v0 = vld [vmem:[%s3930_s1] sm:$0xff]  ;;  %vm571_vm0 = vcmask 261120   ;;  %v570_v1 = vld [vmem:[%s3930_s1 + $0x8] sm:$0xff] }
  0x2a   : > { %572 = vst.msk [vmem:[#allocation4] sm:$0xff] %vm571_vm0, %v569_v0  ;;  %573 = vst.msk [vmem:[#allocation4 + $0x8] sm:$0xff] %vm571_vm0, %v570_v1 }
  0x2b PF: > { %v3189_v2 = vld [vmem:[%s3434_s23 + $0x1c] ss:$12 sps:$4 sm:$0xff]   ;;  %v3191_v3 = vld [vmem:[%s3434_s23 + $0x18] ss:$12 sps:$4 sm:$0xff]   ;;  %v3320_v4 = vmov 0   ;;  %vm617_vm1 = vcmask 261120   ;;  %v730_v19 = vlaneseq  ;;  %s3952_s22 = scalar_lea.vmem %s3933_s4, %s3418_s30  ;;  %s3953_s29 = scalar_lea.vmem %s3934_s5, %s3418_s30 }
  0x2c   : > { %653 = vmatprep.mubr.bf16.mxu0 %v3320_v4  ;;  %633 = vmatprep.subr.bf16.mxu0 %v3189_v2  ;;  %v3192_v5 = vld [vmem:[%s3434_s23 + $0x4] ss:$12 sps:$4 sm:$0xff]   ;;  %v3194_v6 = vld [vmem:[%s3434_s23] ss:$12 sps:$4 sm:$0xff]   ;;  %s3321_s26 = smov 96   ;;  %s3322_s0 = smov 64  }
  0x2d   : > { %634 = vmatpush1.bf16.msra.mxu0 %v3191_v3  ;;  %s3323_s15 = smov 32   ;;  %v3195_v14 = vld [vmem:[%s3434_s23 + $0x20] ss:$12 sps:$4 sm:$0xff]   ;;  %v3324_v15 = vmov 0.0   ;;  %v3196_v16 = vld [vmem:[%s3434_s23 + $0x8] ss:$12 sps:$4 sm:$0xff]   ;;  %s3954_s18 = scalar_lea.vmem %s3936_s7, %s3418_s30 }
  0x2e   : > { %635 = vmatprep.subr.bf16.mxu0 %v3192_v5  ;;  %3035 = vmatprep.subr.bf16.mxu1 %v3324_v15  ;;  %vm3325_vm2 = vmmov 0   ;;  %v3326_v17 = vmov 1983009808   ;;  %v3327_v22 = vmov 1934713408   ;;  %v731_v25 = vshrl.u32 %v730_v19, 7 }
  0x2f   : > { %3036 = vmatpush3.bf16.msra.mxu1 %v3195_v14  ;;  %3039 = vmatprep.mubr.msk.bf16.mxu1 %vm3325_vm2, %v3324_v15  ;;  %v728_v18 = vunpack.c.l.s4 %v3326_v17  ;;  %v760_v23 = vunpack.c.l.s4 %v3327_v22  ;;  %s2961_s23 = sld [smem:[#allocation3 + $0x1]]  ;;  %vm1829_vm4 = vcmask 130048   ;;  %vm2396_vm8 = vcmask 523264  }
  0x30   : > { %3037 = vmatprep.subr.bf16.mxu1 %v3324_v15  ;;  %s1787_s19 = sld [smem:[#allocation3]]  ;;  %vm2399_vm9 = vcmask 785408  }
  0x31   : > { %v574_v7 = vld [vmem:[#allocation4] sm:$0xff]  ;;  %v575_v8 = vld [vmem:[#allocation4 + $0x8] sm:$0xff]  ;;  %636 = vmatpush1.bf16.msra.mxu0 %v3194_v6  ;;  %v729_v24 = vunpack.c.0.s8 %v728_v18  ;;  %v761_v28 = vunpack.c.0.s8 %v760_v23 }
  0x32   : > { %v576_v9 = vpack.c.bf16 %v575_v8, %v574_v7  ;;  %3043 = vmatprep.subr.bf16.mxu0 %v3324_v15 }
  0x33   : > { %3038 = vmatpush3.bf16.msra.mxu1 %v3196_v16  ;;  %v3524_v29 = vsub.s32 %v729_v24, %v731_v25  ;;  %v3526_v35 = vsub.s32 %v761_v28, %v731_v25 }
  0x34   : > { %2943 = vmatmul.mubr.msk.bf16.vlgmr.msra.gmra.mxu0 %vm617_vm1, %v576_v9  ;;  %3049 = vmatprep.subr.bf16.mxu1 %v3324_v15 }
  0x35   : > { %3045 = vmatprep.mubr.msk.bf16.mxu0 %vm3325_vm2, %v3324_v15  ;;  %s1809_s21 = sadd.s32 8, %s2961_s23 }
  0x36   : > { %3040 = vmatmul.mubr.msk.bf16.vlgmr.msra.gmra.mxu1 %vm617_vm1, %v576_v9 }
  0x37   : > { %3051 = vmatprep.mubr.msk.bf16.mxu1 %vm3325_vm2, %v3324_v15 }
  0xf4   : > { %v3479_v10 = vpop.f32.mrf.mxu0 }
  0xf5   : > { %707 = vrot.lane.b32.xlu0 %v3479_v10, %s3321_s26 }
  0xf6   : > { %v657_v11 = vpop.f32.mrf.mxu0 }
  0xf7   : > { %1009 = vrot.lane.b32.xlu1 %v657_v11, %s3322_s0 }
  0xf8   : > { %v3485_v12 = vpop.f32.mrf.mxu0 }
  0xf9   : > { %1003 = vrot.lane.b32.xlu0 %v657_v11, %s3321_s26 }
  0xfa   : > { %v3490_v13 = vpop.f32.mrf.mxu0 }
  0xfb   : > { %709 = vrot.lane.b32.xlu1 %v3485_v12, %s3321_s26 }
  0xfd   : > { %1015 = vrot.lane.b32.xlu0 %v657_v11, %s3323_s15 }
  0xff   : > { %1011 = vrot.lane.b32.xlu1 %v3490_v13, %s3322_s0 }
 0x101   : > { %1005 = vrot.lane.b32.xlu0 %v3490_v13, %s3321_s26 }
 0x103   : > { %1017 = vrot.lane.b32.xlu1 %v3490_v13, %s3323_s15 }
 0x105   : > { %713 = vrot.lane.b32.xlu0 %v3479_v10, %s3322_s0 }
 0x107   : > { %715 = vrot.lane.b32.xlu1 %v3485_v12, %s3322_s0 }
 0x109   : > { %719 = vrot.lane.b32.xlu0 %v3479_v10, %s3323_s15 }
 0x10b   : > { %721 = vrot.lane.b32.xlu1 %v3485_v12, %s3323_s15 }
 0x167   : > { %v3519_v20 = vpop.permute.xlu0 %707 }
 0x169   : > { %v1010_v21 = vpop.permute.xlu1 %1009 }
 0x16a   : > { %v1021_v30 = vcombine.low %v657_v11, %v1010_v21  ;;  %v1022_v31 = vcombine.high %v657_v11, %v1010_v21 }
 0x16b   : > { %v1004_v26 = vpop.permute.xlu0 %1003 }
 0x16c   : > { %v1029_v37 = vrot.slane %v1021_v30, %v3524_v29  ;;  %v1036_v38 = vrot.slane %v1022_v31, %v3524_v29 }
 0x16d   : > { %v3522_v27 = vpop.permute.xlu1 %709 }
 0x16f   : > { %v1016_v32 = vpop.permute.xlu0 %1015 }
 0x170   : > { %v1037_v33 = vcombine.low %v1004_v26, %v1016_v32  ;;  %v1038_v34 = vcombine.high %v1004_v26, %v1016_v32 }
 0x171   : > { %v1012_v36 = vpop.permute.xlu1 %1011 }
 0x172   : > { %v1045_v39 = vrot.slane %v1037_v33, %v3524_v29  ;;  %v1052_v40 = vrot.slane %v1038_v34, %v3524_v29  ;;  %v1089_v46 = vcombine.low %v3490_v13, %v1012_v36  ;;  %v1090_v47 = vcombine.high %v3490_v13, %v1012_v36 }
 0x173   : > { %v1006_v41 = vpop.permute.xlu0 %1005 }
 0x174   : > { %v1053_v42 = vcombine.low %v1029_v37, %v1045_v39  ;;  %v1054_v43 = vcombine.high %v1029_v37, %v1045_v39  ;;  %v1069_v44 = vcombine.low %v1036_v38, %v1052_v40  ;;  %v1070_v45 = vcombine.high %v1036_v38, %v1052_v40 }
 0x175   : > { %v1018_v48 = vpop.permute.xlu1 %1017  ;;  %v1097_v58 = vrot.slane %v1089_v46, %v3524_v29  ;;  %v1104_v59 = vrot.slane %v1090_v47, %v3524_v29 }
 0x176   : > { %v1061_v49 = vrot.slane %v1053_v42, %v3526_v35  ;;  %v1068_v50 = vrot.slane %v1054_v43, %v3526_v35  ;;  %v1077_v51 = vrot.slane %v1069_v44, %v3526_v35  ;;  %v1084_v52 = vrot.slane %v1070_v45, %v3526_v35 }
 0x177   : > { %v1105_v53 = vcombine.low %v1006_v41, %v1018_v48  ;;  %v1106_v54 = vcombine.high %v1006_v41, %v1018_v48  ;;  %v714_v55 = vpop.permute.xlu0 %713 }
 0x178   : > { %v1157_v56 = vcombine.low %v1061_v49, %v1068_v50  ;;  %v2949_v57 = vcombine.high %v1061_v49, %v1068_v50  ;;  %v1173_v63 = vcombine.low %v1077_v51, %v1084_v52  ;;  %v2950_v0 = vcombine.high %v1077_v51, %v1084_v52 }
 0x179   : > { %v1113_v60 = vrot.slane %v1105_v53, %v3524_v29  ;;  %v1120_v61 = vrot.slane %v1106_v54, %v3524_v29  ;;  %v716_v62 = vpop.permute.xlu1 %715  ;;  %v725_v1 = vcombine.low %v3479_v10, %v714_v55  ;;  %v726_v2 = vcombine.high %v3479_v10, %v714_v55 }
 0x17a   : > { %v3545_v8 = vrot.slane %v1157_v56, %v3524_v29  ;;  %v3548_v9 = vrot.slane %v2949_v57, %v3524_v29  ;;  %v793_v11 = vcombine.low %v3485_v12, %v716_v62  ;;  %v794_v13 = vcombine.high %v3485_v12, %v716_v62 }
 0x17b   : > { %v1121_v3 = vcombine.low %v1097_v58, %v1113_v60  ;;  %v1122_v4 = vcombine.high %v1097_v58, %v1113_v60  ;;  %v1137_v5 = vcombine.low %v1104_v59, %v1120_v61  ;;  %v1138_v6 = vcombine.high %v1104_v59, %v1120_v61  ;;  %v720_v7 = vpop.permute.xlu0 %719 }
 0x17c   : > { %v3557_v21 = vrot.slane %v1173_v63, %v3524_v29  ;;  %v3560_v22 = vrot.slane %v2950_v0, %v3524_v29  ;;  %v741_v23 = vcombine.low %v3519_v20, %v720_v7  ;;  %v742_v24 = vcombine.high %v3519_v20, %v720_v7 }
 0x17d   : > { %v1129_v14 = vrot.slane %v1121_v3, %v3526_v35  ;;  %v1136_v16 = vrot.slane %v1122_v4, %v3526_v35  ;;  %v1145_v10 = vrot.slane %v1137_v5, %v3526_v35  ;;  %v1152_v17 = vrot.slane %v1138_v6, %v3526_v35  ;;  %v722_v18 = vpop.permute.xlu1 %721 }
 0x17e   : > { %v733_v26 = vrot.slane %v725_v1, %v3524_v29  ;;  %v740_v28 = vrot.slane %v726_v2, %v3524_v29  ;;  %v749_v30 = vrot.slane %v741_v23, %v3524_v29  ;;  %v756_v31 = vrot.slane %v742_v24, %v3524_v29 }
 0x17f   : > { %v1225_v12 = vcombine.low %v1129_v14, %v1136_v16  ;;  %v2951_v25 = vcombine.high %v1129_v14, %v1136_v16  ;;  %v809_v32 = vcombine.low %v3522_v27, %v722_v18  ;;  %v810_v33 = vcombine.high %v3522_v27, %v722_v18 }
 0x180   : > { %v1241_v34 = vcombine.low %v1145_v10, %v1152_v17  ;;  %v2952_v36 = vcombine.high %v1145_v10, %v1152_v17  ;;  %v801_v37 = vrot.slane %v793_v11, %v3524_v29  ;;  %v808_v20 = vrot.slane %v794_v13, %v3524_v29 }
 0x181   : > { %v757_v38 = vcombine.low %v733_v26, %v749_v30  ;;  %v758_v39 = vcombine.high %v733_v26, %v749_v30  ;;  %v773_v40 = vcombine.low %v740_v28, %v756_v31  ;;  %v774_v41 = vcombine.high %v740_v28, %v756_v31 }
 0x182   : > { %v3573_v42 = vrot.slane %v1225_v12, %v3524_v29  ;;  %v3576_v43 = vrot.slane %v2951_v25, %v3524_v29  ;;  %v817_v44 = vrot.slane %v809_v32, %v3524_v29  ;;  %v824_v27 = vrot.slane %v810_v33, %v3524_v29 }
 0x183   : > { %v765_v45 = vrot.slane %v757_v38, %v3526_v35  ;;  %v772_v46 = vrot.slane %v758_v39, %v3526_v35  ;;  %v781_v47 = vrot.slane %v773_v40, %v3526_v35  ;;  %v788_v48 = vrot.slane %v774_v41, %v3526_v35 }
 0x184   : > { %v825_v49 = vcombine.low %v801_v37, %v817_v44  ;;  %v826_v50 = vcombine.high %v801_v37, %v817_v44  ;;  %v841_v51 = vcombine.low %v808_v20, %v824_v27  ;;  %v842_v52 = vcombine.high %v808_v20, %v824_v27 }
 0x185   : > { %v861_v53 = vcombine.low %v765_v45, %v772_v46  ;;  %v2945_v54 = vcombine.high %v765_v45, %v772_v46  ;;  %v877_v55 = vcombine.low %v781_v47, %v788_v48  ;;  %v2946_v56 = vcombine.high %v781_v47, %v788_v48 }
 0x186   : > { %v833_v57 = vrot.slane %v825_v49, %v3526_v35  ;;  %v840_v58 = vrot.slane %v826_v50, %v3526_v35  ;;  %v849_v59 = vrot.slane %v841_v51, %v3526_v35  ;;  %v856_v60 = vrot.slane %v842_v52, %v3526_v35 }
 0x187   : > { %v1248_v61 = vrot.slane %v1241_v34, %v3524_v29  ;;  %v1256_v62 = vrot.slane %v2952_v36, %v3524_v29  ;;  %v1189_v63 = vcombine.low %v3545_v8, %v3548_v9  ;;  %v1205_v0 = vcombine.low %v3557_v21, %v3560_v22 }
 0x188   : > { %v929_v1 = vcombine.low %v833_v57, %v840_v58  ;;  %v2947_v2 = vcombine.high %v833_v57, %v840_v58  ;;  %v945_v3 = vcombine.low %v849_v59, %v856_v60  ;;  %v2948_v4 = vcombine.high %v849_v59, %v856_v60 }
 0x189   : > { %v868_v5 = vrot.slane %v861_v53, %v3524_v29  ;;  %v876_v6 = vrot.slane %v2945_v54, %v3524_v29  ;;  %v884_v7 = vrot.slane %v877_v55, %v3524_v29  ;;  %v892_v11 = vrot.slane %v2946_v56, %v3524_v29 }
 0x18a   : > { %v936_v13 = vrot.slane %v929_v1, %v3524_v29  ;;  %v944_v14 = vrot.slane %v2947_v2, %v3524_v29  ;;  %v952_v16 = vrot.slane %v945_v3, %v3524_v29  ;;  %v960_v10 = vrot.slane %v2948_v4, %v3524_v29 }
 0x18b   : > { %v1197_v23 = vrot.slane %v1189_v63, %v3526_v35  ;;  %v1213_v24 = vrot.slane %v1205_v0, %v3526_v35  ;;  %v1257_v12 = vcombine.low %v3573_v42, %v3576_v43  ;;  %v1273_v25 = vcombine.low %v1248_v61, %v1256_v62 }
 0x18c   : > { %v961_v17 = vcombine.low %v936_v13, %v944_v14  ;;  %v977_v18 = vcombine.low %v952_v16, %v960_v10  ;;  %v893_v26 = vcombine.low %v868_v5, %v876_v6  ;;  %v909_v28 = vcombine.low %v884_v7, %v892_v11 }
 0x18d   : > { %v1265_v30 = vrot.slane %v1257_v12, %v3526_v35  ;;  %v1281_v31 = vrot.slane %v1273_v25, %v3526_v35  ;;  %v1221_v34 = vcombine.low %v1197_v23, %v1213_v24  ;;  %v1222_v36 = vcombine.high %v1197_v23, %v1213_v24 }
 0x18e   : > { %v969_v32 = vrot.slane %v961_v17, %v3526_v35  ;;  %v985_v33 = vrot.slane %v977_v18, %v3526_v35  ;;  %v1190_v38 = vcombine.high %v3545_v8, %v3548_v9  ;;  %v1206_v39 = vcombine.high %v3557_v21, %v3560_v22 }
 0x18f   : > { %v1289_v37 = vcombine.low %v1265_v30, %v1281_v31  ;;  %v1290_v20 = vcombine.high %v1265_v30, %v1281_v31  ;;  %v901_v40 = vrot.slane %v893_v26, %v3526_v35  ;;  %v917_v41 = vrot.slane %v909_v28, %v3526_v35 }
 0x190   : > { %v1258_v44 = vcombine.high %v3573_v42, %v3576_v43  ;;  %v1274_v27 = vcombine.high %v1248_v61, %v1256_v62  ;;  %v1204_v47 = vrot.slane %v1190_v38, %v3526_v35  ;;  %v1220_v48 = vrot.slane %v1206_v39, %v3526_v35 }
 0x191   : > { %v1293_v45 = vpack.c.bf16 %v1289_v37, %v1221_v34  ;;  %v1294_v46 = vpack.c.bf16 %v1290_v20, %v1222_v36  ;;  %v962_v49 = vcombine.high %v936_v13, %v944_v14  ;;  %v978_v50 = vcombine.high %v952_v16, %v960_v10  ;;  %v3646_v16 = vpop.f32.mrf.mxu1 }
 0x192   : > { %v1272_v8 = vrot.slane %v1258_v44, %v3526_v35  ;;  %v1288_v9 = vrot.slane %v1274_v27, %v3526_v35  ;;  %v993_v51 = vcombine.low %v969_v32, %v985_v33  ;;  %v994_v52 = vcombine.high %v969_v32, %v985_v33 }
 0x193   : > { %v1597_v21 = vsel %vm617_vm1, %v1293_v45, 0  ;;  %v1644_v22 = vsel %vm617_vm1, %v1294_v46, 0  ;;  %v925_v42 = vcombine.low %v901_v40, %v917_v41  ;;  %v926_v54 = vcombine.high %v901_v40, %v917_v41  ;;  %v3041_v10 = vpop.f32.mrf.mxu1 }
 0x194   : > { %3044 = vmatpush3.bf16.xpose.msra.mxu0 %v1597_v21  ;;  %3050 = vmatpush3.bf16.xpose.msra.mxu1 %v1644_v22  ;;  %v1291_v43 = vcombine.low %v1272_v8, %v1288_v9  ;;  %v1292_v53 = vcombine.high %v1272_v8, %v1288_v9  ;;  %v1223_v55 = vcombine.low %v1204_v47, %v1220_v48  ;;  %v1785_v23 = vand.u32 127, %v730_v19 }
 0x195   : > { %3055 = vmatprep.subr.bf16.mxu0 %v3324_v15  ;;  %3061 = vmatprep.subr.bf16.mxu1 %v3324_v15  ;;  %v1224_v56 = vcombine.high %v1204_v47, %v1220_v48  ;;  %v894_v57 = vcombine.high %v868_v5, %v876_v6  ;;  %v910_v58 = vcombine.high %v884_v7, %v892_v11  ;;  %v3648_v17 = vpop.f32.mrf.mxu1  ;;  %v1795_v24 = vstv %s1787_s19  ;;  %s3328_s19 = smov [#allocation4]  }
 0x196   : > { %v997_v59 = vpack.c.bf16 %v993_v51, %v925_v42  ;;  %v998_v60 = vpack.c.bf16 %v994_v52, %v926_v54  ;;  %v1295_v61 = vpack.c.bf16 %v1291_v43, %v1223_v55  ;;  %v976_v63 = vrot.slane %v962_v49, %v3526_v35 }
 0x197   : > { %v1296_v62 = vpack.c.bf16 %v1292_v53, %v1224_v56  ;;  %v992_v0 = vrot.slane %v978_v50, %v3526_v35  ;;  %v908_v1 = vrot.slane %v894_v57, %v3526_v35  ;;  %v924_v2 = vrot.slane %v910_v58, %v3526_v35  ;;  %v3042_v18 = vpop.f32.mrf.mxu1 }
 0x198   : > { %v1691_v3 = vsel %vm617_vm1, %v1295_v61, 0  ;;  %v1810_v12 = vstv %s1809_s21  ;;  %vm3651_vm3 = vcmp.lt.s32.totalorder %v1785_v23, %v1795_v24  ;;  %vm1808_vm5 = vcmp.ge.s32.totalorder %v1785_v23, 8  ;;  %s2766_s21 = sshll.u32 %s3328_s19, 4  ;;  %s2767_s21 = int_to_ptr.vmem [resolvable:$true] %s2766_s21 }
 0x199   : > { %v1738_v4 = vsel %vm617_vm1, %v1296_v62, 0  ;;  %v995_v5 = vcombine.low %v976_v63, %v992_v0  ;;  %v996_v6 = vcombine.high %v976_v63, %v992_v0  ;;  %v927_v7 = vcombine.low %v908_v1, %v924_v2  ;;  %s3265_s30 = scalar_lea.vmem %s2767_s21, 256  ;;  %p3272_p1 = scmp.lt.s32.totalorder %s2767_s21, %s2767_s21 }
 0x19a   : > { %v928_v11 = vcombine.high %v908_v1, %v924_v2  ;;  %vm1811_vm6 = vcmp.lt.s32.totalorder %v1785_v23, %v1810_v12  ;;  %p3266_p12 = scmp.ne.s32.totalorder %s2767_s21, %s3265_s30  ;;  %p3273_p2 = scmp.lt.s32.totalorder %s3265_s30, %s3265_s30 }
 0x19b   : > { %3046 = vmatmul.mubr.msk.bf16.vlgmr.msra.gmra.mxu0 %vm617_vm1, %v997_v59  ;;  %3052 = vmatmul.mubr.msk.bf16.vlgmr.msra.gmra.mxu1 %vm617_vm1, %v998_v60  ;;  %v999_v13 = vpack.c.bf16 %v995_v5, %v927_v7  ;;  %vm3658_vm7 = vmand %vm1808_vm5, %vm1811_vm6 }
 0x19c   : > { %3056 = vmatpush3.bf16.xpose.msra.mxu0 %v1691_v3  ;;  %3062 = vmatpush3.bf16.xpose.msra.mxu1 %v1738_v4  ;;  %v1000_v14 = vpack.c.bf16 %v996_v6, %v928_v11  ;;  %p3274_p3 = por %p3273_p2, %p3272_p1 }
 0x19d   : > { %3057 = vmatprep.mubr.msk.bf16.mxu0 %vm3325_vm2, %v3324_v15  ;;  %3063 = vmatprep.mubr.msk.bf16.mxu1 %vm3325_vm2, %v3324_v15 }
 0x19e   : > { %3067 = vmatprep.subr.bf16.mxu0 %v3324_v15  ;;  %3073 = vmatprep.subr.bf16.mxu1 %v3324_v15 }
 0x1a3   : > { %3058 = vmatmul.mubr.msk.bf16.vlgmr.msra.gmra.mxu0 %vm617_vm1, %v999_v13  ;;  %3064 = vmatmul.mubr.msk.bf16.vlgmr.msra.gmra.mxu1 %vm617_vm1, %v1000_v14 }
 0x1a4   : > { %3069 = vmatprep.mubr.msk.bf16.mxu0 %vm3325_vm2, %v3324_v15  ;;  %3075 = vmatprep.mubr.msk.bf16.mxu1 %vm3325_vm2, %v3324_v15 }
 0x25b   : > { %v1633_v26 = vpop.f32.mrf.mxu0  ;;  %v1680_v28 = vpop.f32.mrf.mxu1 }
 0x25c   : > { %v1821_v30 = vsel %vm3651_vm3, %v1633_v26, -1000000.0  ;;  %v1823_v34 = vsel %vm3651_vm3, %v1680_v28, -1000000.0 }
 0x25d   : > { %v3047_v31 = vpop.f32.mrf.mxu0  ;;  %v3053_v32 = vpop.f32.mrf.mxu1  ;;  %v1830_v33 = vsel %vm1829_vm4, %v1821_v30, -inf  ;;  %v1836_v40 = vsel %vm1829_vm4, %v1823_v34, -inf }
 0x25e   : > { %1831 = vmax.xlane.f32.xlu0 %v1830_v33 }
 0x25f   : > { %v1636_v36 = vpop.f32.mrf.mxu0  ;;  %v1683_v37 = vpop.f32.mrf.mxu1 }
 0x260   : > { %v1822_v20 = vsel %vm3658_vm7, %v1636_v36, -1000000.0  ;;  %v1824_v44 = vsel %vm3658_vm7, %v1683_v37, -1000000.0 }
 0x261   : > { %v3048_v38 = vpop.f32.mrf.mxu0  ;;  %v3054_v39 = vpop.f32.mrf.mxu1  ;;  %v1833_v41 = vsel %vm1829_vm4, %v1822_v20, -inf  ;;  %v1839_v49 = vsel %vm1829_vm4, %v1824_v44, -inf }
 0x262   : > { %1837 = vmax.xlane.f32.xlu0 %v1836_v40  ;;  %1834 = vmax.xlane.f32.xlu1 %v1833_v41 }
 0x263   : > { %v1727_v27 = vpop.f32.mrf.mxu0  ;;  %v1774_v45 = vpop.f32.mrf.mxu1 }
 0x264   : > { %v1825_v46 = vsel %vm3651_vm3, %v1727_v27, -1000000.0  ;;  %v1827_v8 = vsel %vm3651_vm3, %v1774_v45, -1000000.0 }
 0x265   : > { %v3059_v47 = vpop.f32.mrf.mxu0  ;;  %v3065_v48 = vpop.f32.mrf.mxu1  ;;  %v1842_v50 = vsel %vm1829_vm4, %v1825_v46, -inf  ;;  %v1848_v42 = vsel %vm1829_vm4, %v1827_v8, -inf }
 0x266   : > { %1840 = vmax.xlane.f32.xlu0 %v1839_v49  ;;  %1843 = vmax.xlane.f32.xlu1 %v1842_v50 }
 0x267   : > { %v1730_v9 = vpop.f32.mrf.mxu0  ;;  %v1777_v21 = vpop.f32.mrf.mxu1 }
 0x268   : > { %v3678_v22 = vsel %vm3658_vm7, %v1730_v9, -1000000.0  ;;  %v1828_v53 = vsel %vm3658_vm7, %v1777_v21, -1000000.0 }
 0x269   : > { %v3060_v51 = vpop.f32.mrf.mxu0  ;;  %v3066_v52 = vpop.f32.mrf.mxu1  ;;  %v1845_v43 = vsel %vm1829_vm4, %v3678_v22, -inf  ;;  %v1851_v54 = vsel %vm1829_vm4, %v1828_v53, -inf }
 0x26a   : > { %1849 = vmax.xlane.f32.xlu1 %v1848_v42  ;;  %1846 = vmax.xlane.f32.xlu0 %v1845_v43 }
 0x26e   : > { %1852 = vmax.xlane.f32.xlu0 %v1851_v54 }
 0x27b   : > { %1299 = vrot.lane.b32.xlu1 %v3646_v16, %s3321_s26 }
 0x27f   : > { %1305 = vrot.lane.b32.xlu1 %v3646_v16, %s3322_s0 }
 0x283   : > { %1307 = vrot.lane.b32.xlu1 %v3648_v17, %s3322_s0 }
 0x284   : > { %1301 = vrot.lane.b32.xlu0 %v3648_v17, %s3321_s26 }
 0x288   : > { %1311 = vrot.lane.b32.xlu0 %v3646_v16, %s3323_s15 }
 0x2e7   : > { %v1832_v55 = vpop.xlane.xlu0 %1831 }
 0x2e8   : > { %v1854_v56 = vsub.f32 %v1821_v30, %v1832_v55 }
 0x2ea   : > { %v1862_v57 = vmul.f32 1.442695, %v1854_v56 }
 0x2eb   : > { %v1838_v58 = vpop.xlane.xlu0 %1837  ;;  %v1835_v59 = vpop.xlane.xlu1 %1834 }
 0x2ec   : > { %3211 = vpow2.f32 %v1862_v57  ;;  %v1856_v60 = vsub.f32 %v1823_v34, %v1838_v58  ;;  %v1855_v61 = vsub.f32 %v1822_v20, %v1835_v59 }
 0x2ee   : > { %v1866_v62 = vmul.f32 1.442695, %v1856_v60  ;;  %v1864_v63 = vmul.f32 1.442695, %v1855_v61 }
 0x2ef   : > { %v1841_v0 = vpop.xlane.xlu0 %1840  ;;  %v1844_v1 = vpop.xlane.xlu1 %1843 }
 0x2f0   : > { %3213 = vpow2.f32 %v1866_v62  ;;  %v1857_v2 = vsub.f32 %v1824_v44, %v1841_v0  ;;  %v1858_v3 = vsub.f32 %v1825_v46, %v1844_v1 }
 0x2f1   : > { %3215 = vpow2.f32 %v1864_v63 }
 0x2f2   : > { %v1868_v4 = vmul.f32 1.442695, %v1857_v2  ;;  %v1870_v5 = vmul.f32 1.442695, %v1858_v3 }
 0x2f3   : > { %v1850_v6 = vpop.xlane.xlu1 %1849  ;;  %v1847_v7 = vpop.xlane.xlu0 %1846 }
 0x2f4   : > { %3217 = vpow2.f32 %v1868_v4  ;;  %v1860_v11 = vsub.f32 %v1827_v8, %v1850_v6  ;;  %v1859_v20 = vsub.f32 %v3678_v22, %v1847_v7 }
 0x2f5   : > { %3219 = vpow2.f32 %v1870_v5 }
 0x2f6   : > { %v1874_v13 = vmul.f32 1.442695, %v1860_v11  ;;  %v1872_v38 = vmul.f32 1.442695, %v1859_v20 }
 0x2f7   : > { %v1853_v14 = vpop.xlane.xlu0 %1852  ;;  %v1300_v44 = vpop.permute.xlu1 %1299 }
 0x2f8   : > { %v1861_v10 = vsub.f32 %v1828_v53, %v1853_v14  ;;  %3221 = vpow2.f32 %v1874_v13 }
 0x2f9   : > { %v3696_v18 = vpop.eup %3211 }
 0x2fa   : > { %v1878_v23 = vsel %vm1829_vm4, %v3696_v18, 0.0  ;;  %v1876_v24 = vmul.f32 1.442695, %v1861_v10 }
 0x2fb   : > { %1879 = vadd.xlane.f32.xlu1 %v1878_v23  ;;  %v1302_v41 = vpop.permute.xlu0 %1301  ;;  %v1306_v45 = vpop.permute.xlu1 %1305 }
 0x2fc   : > { %3223 = vpow2.f32 %v1876_v24  ;;  %v1317_v48 = vcombine.low %v3646_v16, %v1306_v45  ;;  %v1318_v49 = vcombine.high %v3646_v16, %v1306_v45 }
 0x2fd   : > { %v3700_v12 = vpop.eup %3213  ;;  %3225 = vpow2.f32 %v1872_v38 }
 0x2fe   : > { %v3702_v25 = vpop.eup %3215  ;;  %v1884_v26 = vsel %vm1829_vm4, %v3700_v12, 0.0  ;;  %v1325_v21 = vrot.slane %v1317_v48, %v3524_v29  ;;  %v1332_v22 = vrot.slane %v1318_v49, %v3524_v29 }
 0x2ff   : > { %1885 = vadd.xlane.f32.xlu1 %v1884_v26  ;;  %v1881_v28 = vsel %vm1829_vm4, %v3702_v25, 0.0  ;;  %v1312_v27 = vpop.permute.xlu0 %1311  ;;  %v1308_v8 = vpop.permute.xlu1 %1307 }
 0x300   : > { %1882 = vadd.xlane.f32.xlu0 %v1881_v28  ;;  %v1333_v46 = vcombine.low %v1300_v44, %v1312_v27  ;;  %v1334_v47 = vcombine.high %v1300_v44, %v1312_v27  ;;  %v1385_v59 = vcombine.low %v3648_v17, %v1308_v8  ;;  %v1386_v60 = vcombine.high %v3648_v17, %v1308_v8 }
 0x301   : > { %v3708_v30 = vpop.eup %3217 }
 0x302   : > { %v1887_v31 = vsel %vm1829_vm4, %v3708_v30, 0.0  ;;  %v3712_v32 = vpop.eup %3219  ;;  %v1341_v50 = vrot.slane %v1333_v46, %v3524_v29  ;;  %v1348_v9 = vrot.slane %v1334_v47, %v3524_v29  ;;  %v1393_v5 = vrot.slane %v1385_v59, %v3524_v29 }
 0x303   : > { %v1890_v33 = vsel %vm1829_vm4, %v3712_v32, 0.0  ;;  %v1400_v6 = vrot.slane %v1386_v60, %v3524_v29 }
 0x304   : > { %1888 = vadd.xlane.f32.xlu0 %v1887_v31  ;;  %v1349_v51 = vcombine.low %v1325_v21, %v1341_v50  ;;  %v1350_v52 = vcombine.high %v1325_v21, %v1341_v50  ;;  %v1365_v42 = vcombine.low %v1332_v22, %v1348_v9  ;;  %v1366_v43 = vcombine.high %v1332_v22, %v1348_v9 }
 0x305   : > { %v3716_v19 = vpop.eup %3221 }
 0x306   : > { %v1896_v34 = vsel %vm1829_vm4, %v3716_v19, 0.0  ;;  %v1357_v54 = vrot.slane %v1349_v51, %v3526_v35  ;;  %v1364_v55 = vrot.slane %v1350_v52, %v3526_v35  ;;  %v1373_v16 = vrot.slane %v1365_v42, %v3526_v35 }
 0x307   : > { %v1380_v56 = vrot.slane %v1366_v43, %v3526_v35 }
 0x308   : > { %1891 = vadd.xlane.f32.xlu0 %v1890_v33  ;;  %v1453_v61 = vcombine.low %v1357_v54, %v1364_v55  ;;  %v2953_v62 = vcombine.high %v1357_v54, %v1364_v55 }
 0x309   : > { %v3720_v36 = vpop.eup %3223  ;;  %v1469_v63 = vcombine.low %v1373_v16, %v1380_v56  ;;  %v2954_v0 = vcombine.high %v1373_v16, %v1380_v56 }
 0x30a   : > { %v1899_v37 = vsel %vm1829_vm4, %v3720_v36, 0.0  ;;  %v3727_v39 = vpop.eup %3225  ;;  %v1460_v7 = vrot.slane %v1453_v61, %v3524_v29  ;;  %v1468_v13 = vrot.slane %v2953_v62, %v3524_v29 }
 0x30b   : > { %v1893_v40 = vsel %vm1829_vm4, %v3727_v39, 0.0  ;;  %v1476_v14 = vrot.slane %v1469_v63, %v3524_v29  ;;  %v1484_v10 = vrot.slane %v2954_v0, %v3524_v29 }
 0x30c   : > { %1897 = vadd.xlane.f32.xlu0 %v1896_v34  ;;  %v1485_v38 = vcombine.low %v1460_v7, %v1468_v13  ;;  %v1486_v47 = vcombine.high %v1460_v7, %v1468_v13 }
 0x30d   : > { %v1502_v22 = vcombine.high %v1476_v14, %v1484_v10 }
 0x30e   : > { %v1493_v9 = vrot.slane %v1485_v38, %v3526_v35  ;;  %v1500_v60 = vrot.slane %v1486_v47, %v3526_v35 }
 0x30f   : > { %v1516_v61 = vrot.slane %v1502_v22, %v3526_v35 }
 0x310   : > { %1900 = vadd.xlane.f32.xlu0 %v1899_v37  ;;  %1313 = vrot.lane.b32.xlu1 %v3648_v17, %s3323_s15 }
 0x334   : > { %1894 = vadd.xlane.f32.xlu1 %v1893_v40  ;;  %v1501_v40 = vcombine.low %v1476_v14, %v1484_v10  ;;  %v1519_v14 = vcombine.low %v1500_v60, %v1516_v61  ;;  %v1520_v10 = vcombine.high %v1500_v60, %v1516_v61 }
 0x336   : > { %v1509_v21 = vrot.slane %v1501_v40, %v3526_v35  ;;  %v3197_v40 = vld [vmem:[%s3425_s17 + $0x38] sm:$0xff]  }
 0x338   : > { %v1517_v63 = vcombine.low %v1493_v9, %v1509_v21 }
 0x384   : > { %v1880_v53 = vpop.xlane.xlu1 %1879 }
 0x388   : > { %v1886_v57 = vpop.xlane.xlu1 %1885 }
 0x389   : > { %v1883_v58 = vpop.xlane.xlu0 %1882 }
 0x38a   : > { %3227 = vrcp.f32 %v1883_v58 }
 0x38c   : > { %v1314_v1 = vpop.permute.xlu1 %1313 }
 0x38d   : > { %v1401_v2 = vcombine.low %v1302_v41, %v1314_v1  ;;  %v1402_v3 = vcombine.high %v1302_v41, %v1314_v1  ;;  %v1889_v4 = vpop.xlane.xlu0 %1888  ;;  %v1518_v1 = vcombine.high %v1493_v9, %v1509_v21 }
 0x38e   : > { %3229 = vrcp.f32 %v1889_v4 }
 0x38f   : > { %3231 = vrcp.f32 %v1880_v53  ;;  %v1409_v11 = vrot.slane %v1401_v2, %v3524_v29  ;;  %v1416_v17 = vrot.slane %v1402_v3, %v3524_v29 }
 0x390   : > { %3233 = vrcp.f32 %v1886_v57 }
 0x391   : > { %v1417_v23 = vcombine.low %v1393_v5, %v1409_v11  ;;  %v1418_v24 = vcombine.high %v1393_v5, %v1409_v11  ;;  %v1433_v26 = vcombine.low %v1400_v6, %v1416_v17  ;;  %v1434_v28 = vcombine.high %v1400_v6, %v1416_v17  ;;  %v3751_v31 = vpop.xlane.xlu0 %1891 }
 0x393   : > { %v1425_v33 = vrot.slane %v1417_v23, %v3526_v35  ;;  %v1432_v34 = vrot.slane %v1418_v24, %v3526_v35  ;;  %v1441_v37 = vrot.slane %v1433_v26, %v3526_v35  ;;  %v1448_v20 = vrot.slane %v1434_v28, %v3526_v35 }
 0x395   : > { %v1521_v41 = vcombine.low %v1425_v33, %v1432_v34  ;;  %v2955_v44 = vcombine.high %v1425_v33, %v1432_v34  ;;  %v1537_v27 = vcombine.low %v1441_v37, %v1448_v20  ;;  %v2956_v45 = vcombine.high %v1441_v37, %v1448_v20  ;;  %v1898_v46 = vpop.xlane.xlu0 %1897 }
 0x396   : > { %3235 = vrcp.f32 %v1898_v46 }
 0x397   : > { %v1528_v48 = vrot.slane %v1521_v41, %v3524_v29  ;;  %v1536_v49 = vrot.slane %v2955_v44, %v3524_v29  ;;  %v1544_v50 = vrot.slane %v1537_v27, %v3524_v29  ;;  %v1552_v8 = vrot.slane %v2956_v45, %v3524_v29  ;;  %v3228_v54 = vpop.eup %3227  ;;  %v3199_v41 = vld [vmem:[%s3425_s17 + $0x28] sm:$0xff]   ;;  %v3202_v44 = vld [vmem:[%s3425_s17 + $0x10] sm:$0xff]  }
 0x398   : > { %v1911_v3 = vmul.f32 %v3228_v54, %v3702_v25 }
 0x399   : > { %v1901_v51 = vpop.xlane.xlu0 %1900  ;;  %v1553_v52 = vcombine.low %v1528_v48, %v1536_v49  ;;  %v1569_v42 = vcombine.low %v1544_v50, %v1552_v8  ;;  %v1554_v43 = vcombine.high %v1528_v48, %v1536_v49  ;;  %v1570_v53 = vcombine.high %v1544_v50, %v1552_v8 }
 0x39a   : > { %3237 = vrcp.f32 %v1901_v51 }
 0x39b   : > { %v3230_v55 = vpop.eup %3229  ;;  %v1561_v16 = vrot.slane %v1553_v52, %v3526_v35  ;;  %v1577_v56 = vrot.slane %v1569_v42, %v3526_v35  ;;  %v1568_v57 = vrot.slane %v1554_v43, %v3526_v35  ;;  %v1584_v58 = vrot.slane %v1570_v53, %v3526_v35 }
 0x39c   : > { %v3232_v59 = vpop.eup %3231  ;;  %v1913_v4 = vmul.f32 %v3230_v55, %v3708_v30  ;;  %3239 = vrcp.f32 %v3751_v31  ;;  %v3198_v31 = vld [vmem:[%s3425_s17 + $0x30] sm:$0xff]  }
 0x39d   : > { %v3234_v62 = vpop.eup %3233  ;;  %v1585_v0 = vcombine.low %v1561_v16, %v1577_v56  ;;  %v1586_v2 = vcombine.high %v1561_v16, %v1577_v56  ;;  %v1587_v7 = vcombine.low %v1568_v57, %v1584_v58  ;;  %v1588_v11 = vcombine.high %v1568_v57, %v1584_v58 }
 0x39e   : > { %v1910_v17 = vmul.f32 %v3232_v59, %v3696_v18  ;;  %v1912_v13 = vmul.f32 %v3234_v62, %v3700_v12 }
 0x39f   : > { %v1589_v5 = vpack.c.bf16 %v1585_v0, %v1517_v63  ;;  %v1590_v6 = vpack.c.bf16 %v1586_v2, %v1518_v1  ;;  %v1591_v25 = vpack.c.bf16 %v1587_v7, %v1519_v14  ;;  %v1592_v30 = vpack.c.bf16 %v1588_v11, %v1520_v10 }
 0x3a0   : > { %v1918_v23 = vpack.c.bf16 %v1911_v3, %v1910_v17  ;;  %v1919_v24 = vpack.c.bf16 %v1913_v4, %v1912_v13 }
 0x3a1   : > { %3068 = vmatpush3.bf16.msra.mxu0 %v1589_v5  ;;  %3074 = vmatpush3.bf16.msra.mxu1 %v1590_v6 }
 0x3a2   : > { %3079 = vmatprep.subr.bf16.mxu0 %v3324_v15  ;;  %3085 = vmatprep.subr.bf16.mxu1 %v3324_v15 }
 0x3a3   : > { %v3236_v26 = vpop.eup %3235 }
 0x3a4   : > { %3070 = vmatmul.mubr.msk.bf16.vlgmr.msra.gmra.mxu0 %vm1829_vm4, %v1918_v23  ;;  %3076 = vmatmul.mubr.msk.bf16.vlgmr.msra.gmra.mxu1 %vm1829_vm4, %v1919_v24  ;;  %v1916_v12 = vmul.f32 %v3236_v26, %v3716_v19 }
 0x3a5   : > { %3080 = vmatpush3.bf16.msra.mxu0 %v1591_v25  ;;  %3086 = vmatpush3.bf16.msra.mxu1 %v1592_v30 }
 0x3a6   : > { %3087 = vmatprep.mubr.msk.bf16.mxu1 %vm3325_vm2, %v3324_v15  ;;  %3081 = vmatprep.mubr.msk.bf16.mxu0 %vm3325_vm2, %v3324_v15 }
 0x3a7   : > { %v3238_v18 = vpop.eup %3237  ;;  %3091 = vmatprep.subr.bf16.mxu0 %v3324_v15  ;;  %3111 = vmatprep.subr.bf16.mxu1 %v3324_v15 }
 0x3a8   : > { %v1917_v28 = vmul.f32 %v3238_v18, %v3720_v36 }
 0x3a9   : > { %v3240_v37 = vpop.eup %3239 }
 0x3aa   : > { %v1921_v33 = vpack.c.bf16 %v1917_v28, %v1916_v12  ;;  %v1914_v38 = vmul.f32 %v3240_v37, %v3712_v32  ;;  %v3200_v32 = vld [vmem:[%s3425_s17 + $0x20] sm:$0xff]  }
 0x3ac   : > { %3088 = vmatmul.mubr.msk.bf16.vlgmr.msra.gmra.mxu1 %vm1829_vm4, %v1921_v33 }
 0x3ad   : > { %3115 = vmatprep.mubr.msk.bf16.mxu1 %vm3325_vm2, %v3324_v15 }
 0x3bd   : > { %v1895_v34 = vpop.xlane.xlu1 %1894 }
 0x3be   : > { %3241 = vrcp.f32 %v1895_v34 }
 0x3cb   : > { %v3242_v20 = vpop.eup %3241 }
 0x3cc   : > { %v1915_v19 = vmul.f32 %v3242_v20, %v3727_v39  ;;  %v3201_v39 = vld [vmem:[%s3425_s17 + $0x18] sm:$0xff]  }
 0x3ce   : > { %v1920_v36 = vpack.c.bf16 %v1915_v19, %v1914_v38 }
 0x3d0   : > { %3082 = vmatmul.mubr.msk.bf16.vlgmr.msra.gmra.mxu0 %vm1829_vm4, %v1920_v36 }
 0x3d1   : > { %3107 = vmatprep.mubr.msk.bf16.mxu0 %vm3325_vm2, %v3324_v15  ;;  %3092 = vmatpush3.bf16.msra.mxu0 %v3197_v40 }
 0x3d2   : > { %3093 = vmatprep.subr.bf16.mxu0 %v3324_v15 }
 0x3d5   : > { %3094 = vmatpush3.bf16.msra.mxu0 %v3198_v31 }
 0x3d6   : > { %3095 = vmatprep.subr.bf16.mxu0 %v3324_v15 }
 0x3d9   : > { %3096 = vmatpush3.bf16.msra.mxu0 %v3199_v41 }
 0x3da   : > { %3097 = vmatprep.subr.bf16.mxu0 %v3324_v15 }
 0x3dd   : > { %3098 = vmatpush3.bf16.msra.mxu0 %v3200_v32 }
 0x3de   : > { %3099 = vmatprep.subr.bf16.mxu0 %v3324_v15 }
 0x3e1   : > { %3100 = vmatpush3.bf16.msra.mxu0 %v3201_v39 }
 0x3e2   : > { %3101 = vmatprep.subr.bf16.mxu0 %v3324_v15 }
 0x3e5   : > { %3102 = vmatpush3.bf16.msra.mxu0 %v3202_v44 }
 0x3e6   : > { %3103 = vmatprep.subr.bf16.mxu0 %v3324_v15 }
 0x464   : > { %v1959_v27 = vpop.f32.mrf.mxu0  ;;  %v2003_v45 = vpop.f32.mrf.mxu1 }
 0x466   : > { %v3071_v46 = vpop.f32.mrf.mxu0  ;;  %v3077_v47 = vpop.f32.mrf.mxu1 }
 0x468   : > { %v1962_v48 = vpop.f32.mrf.mxu0  ;;  %v2006_v49 = vpop.f32.mrf.mxu1 }
 0x46a   : > { %v3072_v50 = vpop.f32.mrf.mxu0  ;;  %v3078_v8 = vpop.f32.mrf.mxu1 }
 0x46c   : > { %v2091_v9 = vpop.f32.mrf.mxu1 }
 0x46d   : > { %v2114_v52 = vcombine.low %v2003_v45, %v2091_v9  ;;  %v2115_v42 = vcombine.high %v2003_v45, %v2091_v9 }
 0x46e   : > { %v3089_v21 = vpop.f32.mrf.mxu1 }
 0x46f   : > { %v2122_v16 = vrot.slane %v2114_v52, %v3524_v29  ;;  %v2129_v56 = vrot.slane %v2115_v42, %v3524_v29 }
 0x470   : > { %v2094_v22 = vpop.f32.mrf.mxu1 }
 0x471   : > { %v2182_v59 = vcombine.low %v2006_v49, %v2094_v22  ;;  %v2183_v60 = vcombine.high %v2006_v49, %v2094_v22  ;;  %v3203_v49 = vld [vmem:[%s3425_s17 + $0x8] sm:$0xff]  }
 0x472   : > { %v3090_v51 = vpop.f32.mrf.mxu1  ;;  %3104 = vmatpush3.bf16.msra.mxu0 %v3203_v49  ;;  %v3205_v49 = vld [vmem:[%s3448_s3 + $0x8] sm:$0xff]  }
 0x473   : > { %v2190_v17 = vrot.slane %v2182_v59, %v3524_v29  ;;  %v2197_v13 = vrot.slane %v2183_v60, %v3524_v29  ;;  %3105 = vmatprep.subr.bf16.mxu0 %v3324_v15  ;;  %3112 = vmatpush3.bf16.msra.mxu1 %v3205_v49 }
 0x474   : > { %3113 = vmatprep.subr.bf16.mxu1 %v3324_v15 }
 0x490   : > { %v2047_v43 = vpop.f32.mrf.mxu0 }
 0x491   : > { %v2098_v53 = vcombine.low %v1959_v27, %v2047_v43  ;;  %v2099_v54 = vcombine.high %v1959_v27, %v2047_v43 }
 0x492   : > { %v3083_v55 = vpop.f32.mrf.mxu0 }
 0x493   : > { %v2106_v57 = vrot.slane %v2098_v53, %v3524_v29  ;;  %v2113_v58 = vrot.slane %v2099_v54, %v3524_v29 }
 0x494   : > { %v2050_v61 = vpop.f32.mrf.mxu0 }
 0x495   : > { %v2130_v62 = vcombine.low %v2106_v57, %v2122_v16  ;;  %v2131_v63 = vcombine.high %v2106_v57, %v2122_v16  ;;  %v2146_v0 = vcombine.low %v2113_v58, %v2129_v56  ;;  %v2147_v1 = vcombine.high %v2113_v58, %v2129_v56  ;;  %v3204_v57 = vld [vmem:[%s3425_s17] sm:$0xff]   ;;  %s3955_s17 = sadd.s32 4294967295, %s3317_s28  }
 0x496   : > { %v2166_v2 = vcombine.low %v1962_v48, %v2050_v61  ;;  %v2167_v3 = vcombine.high %v1962_v48, %v2050_v61  ;;  %v3084_v4 = vpop.f32.mrf.mxu0  ;;  %3106 = vmatpush3.bf16.msra.mxu0 %v3204_v57  ;;  %p3904_p11 = scmp.eq.s32.totalorder %s3955_s17, 1 }
 0x497   : > { %v2138_v5 = vrot.slane %v2130_v62, %v3526_v35  ;;  %v2145_v6 = vrot.slane %v2131_v63, %v3526_v35  ;;  %v2154_v7 = vrot.slane %v2146_v0, %v3526_v35  ;;  %v2161_v11 = vrot.slane %v2147_v1, %v3526_v35 }
 0x498   : > { %v2174_v14 = vrot.slane %v2166_v2, %v3524_v29  ;;  %v2181_v10 = vrot.slane %v2167_v3, %v3524_v29  ;;  %p3267_p13 = pnand %p3266_p12, %p3904_p11 }
 0x499   : > { %v2234_v23 = vcombine.low %v2138_v5, %v2145_v6  ;;  %v2966_v24 = vcombine.high %v2138_v5, %v2145_v6  ;;  %v2250_v25 = vcombine.low %v2154_v7, %v2161_v11  ;;  %v2967_v30 = vcombine.high %v2154_v7, %v2161_v11 }
 0x49a   : > { %v2198_v26 = vcombine.low %v2174_v14, %v2190_v17  ;;  %v2199_v18 = vcombine.high %v2174_v14, %v2190_v17  ;;  %v2214_v12 = vcombine.low %v2181_v10, %v2197_v13  ;;  %v2215_v28 = vcombine.high %v2181_v10, %v2197_v13  ;;  %p3268_p0 = pneg %p3267_p13 }
 0x49b   : > { %v2241_v33 = vrot.slane %v2234_v23, %v3524_v29  ;;  %v2249_v34 = vrot.slane %v2966_v24, %v3524_v29  ;;  %v2257_v37 = vrot.slane %v2250_v25, %v3524_v29  ;;  %v2265_v20 = vrot.slane %v2967_v30, %v3524_v29 }
 0x49c   : > { %v2206_v38 = vrot.slane %v2198_v26, %v3526_v35  ;;  %v2213_v19 = vrot.slane %v2199_v18, %v3526_v35  ;;  %v2222_v36 = vrot.slane %v2214_v12, %v3526_v35  ;;  %v2229_v40 = vrot.slane %v2215_v28, %v3526_v35  ;;  %v3251_v28 = vld [vmem:[#allocation4] sm:$0xff]  ;;  %p3275_p4 = pnand %p3274_p3, %p3268_p0 }
 0x49d   : > { %v2267_v31 = vcombine.high %v2241_v33, %v2249_v34  ;;  %v2283_v41 = vcombine.high %v2257_v37, %v2265_v20  ;;  %v2266_v32 = vcombine.low %v2241_v33, %v2249_v34  ;;  %v2282_v39 = vcombine.low %v2257_v37, %v2265_v20 }
 0x49e   : > { %v2302_v44 = vcombine.low %v2206_v38, %v2213_v19  ;;  %v2968_v27 = vcombine.high %v2206_v38, %v2213_v19  ;;  %v2318_v45 = vcombine.low %v2222_v36, %v2229_v40  ;;  %v2969_v46 = vcombine.high %v2222_v36, %v2229_v40  ;;  %v3252_v38 = vld [vmem:[#allocation4 + $0x8] sm:$0xff] }
 0x49f   : > { %v2274_v47 = vrot.slane %v2266_v32, %v3526_v35  ;;  %v2290_v48 = vrot.slane %v2282_v39, %v3526_v35  ;;  %v2281_v22 = vrot.slane %v2267_v31, %v3526_v35  ;;  %v2297_v51 = vrot.slane %v2283_v41, %v3526_v35 }
 0x4a0   : > { %v2309_v50 = vrot.slane %v2302_v44, %v3524_v29  ;;  %v2317_v8 = vrot.slane %v2968_v27, %v3524_v29  ;;  %v2325_v9 = vrot.slane %v2318_v45, %v3524_v29  ;;  %v2333_v21 = vrot.slane %v2969_v46, %v3524_v29 }
 0x4a1   : > { %v2298_v52 = vcombine.low %v2274_v47, %v2290_v48  ;;  %v2300_v58 = vcombine.low %v2281_v22, %v2297_v51  ;;  %v2299_v60 = vcombine.high %v2274_v47, %v2290_v48  ;;  %v2301_v2 = vcombine.high %v2281_v22, %v2297_v51 }
 0x4a2   : > { %v2335_v42 = vcombine.high %v2309_v50, %v2317_v8  ;;  %v2351_v43 = vcombine.high %v2325_v9, %v2333_v21  ;;  %v2334_v53 = vcombine.low %v2309_v50, %v2317_v8  ;;  %v2350_v54 = vcombine.low %v2325_v9, %v2333_v21  ;;  %v3206_v50 = vld [vmem:[%s3448_s3] sm:$0xff]  }
 0x4a3   : > { %3114 = vmatpush3.bf16.msra.mxu1 %v3206_v50 }
 0x4a4   : > { %v2349_v55 = vrot.slane %v2335_v42, %v3526_v35  ;;  %v2365_v16 = vrot.slane %v2351_v43, %v3526_v35  ;;  %v2342_v56 = vrot.slane %v2334_v53, %v3526_v35  ;;  %v2358_v29 = vrot.slane %v2350_v54, %v3526_v35  ;;  %3119 = vmatprep.subr.bf16.mxu1 %v3324_v15  ;;  %v2978_v53 = vld [vmem:[%s3952_s22] ss:$0 sm:$0xff] }
 0x4a6   : > { %v2368_v59 = vcombine.low %v2349_v55, %v2365_v16  ;;  %v2367_v61 = vcombine.high %v2342_v56, %v2358_v29  ;;  %v2366_v62 = vcombine.low %v2342_v56, %v2358_v29  ;;  %v2369_v1 = vcombine.high %v2349_v55, %v2365_v16  ;;  %v2979_v56 = vld [vmem:[%s3953_s29] ss:$0 sm:$0xff] }
 0x4a8   : > { %v3179_v63 = vpack.i.bf16 %v2368_v59, %v2300_v58  ;;  %v3174_v0 = vpack.i.bf16 %v2367_v61, %v2299_v60  ;;  %v3184_v3 = vpack.i.bf16 %v2369_v1, %v2301_v2  ;;  %v3207_v59 = vld [vmem:[%s3454_s13 + $0x18] sm:$0xff]   ;;  %v3208_v61 = vld [vmem:[%s3454_s13 + $0x10] sm:$0xff]  }
 0x4aa   : > { %3180 = vrot.lane.b32.xlu0 %v3179_v63, %s3322_s0  ;;  %3175 = vrot.lane.b32.xlu1 %v3174_v0, %s3323_s15  ;;  %v3210_v63 = vld [vmem:[%s3454_s13] sm:$0xff]  }
 0x4ab   : > { %v2980_v0 = vld [vmem:[%s3954_s18] ss:$0 sm:$0xff] }
 0x4ae   : > { %3185 = vrot.lane.b32.xlu1 %v3184_v3, %s3321_s26 }
 0x51c   : > { %v3181_v4 = vpop.permute.xlu0 %3180  ;;  %v3176_v35 = vpop.permute.xlu1 %3175 }
 0x51d   : > { %v3178_v5 = vunpack.i.h.bf16 %v3176_v35  ;;  %v3177_v6 = vunpack.i.l.bf16 %v3176_v35  ;;  %v3183_v7 = vunpack.i.h.bf16 %v3181_v4  ;;  %v3182_v11 = vunpack.i.l.bf16 %v3181_v4 }
 0x51f   : > { %v2394_v17 = vsel %vm617_vm1, %v2298_v52, %v3177_v6  ;;  %v2395_v13 = vsel %vm617_vm1, %v2366_v62, %v3178_v5  ;;  %v3209_v62 = vld [vmem:[%s3454_s13 + $0x8] sm:$0xff]  }
 0x520   : > { %v3186_v14 = vpop.permute.xlu1 %3185  ;;  %v2397_v24 = vsel %vm2396_vm8, %v2394_v17, %v3182_v11  ;;  %v2398_v25 = vsel %vm2396_vm8, %v2395_v13, %v3183_v7 }
 0x521   : > { %v3188_v10 = vunpack.i.h.bf16 %v3186_v14  ;;  %v3187_v23 = vunpack.i.l.bf16 %v3186_v14 }
 0x523   : > { %v2400_v30 = vsel %vm2399_vm9, %v2397_v24, %v3187_v23  ;;  %v2401_v26 = vsel %vm2399_vm9, %v2398_v25, %v3188_v10 }
 0x524   : > { %v2402_v18 = vpack.c.bf16 %v2401_v26, %v2400_v30 }
 0x526   : > { %3108 = vmatmul.mubr.bf16.vlgmr.msra.gmra.mxu0 %v2402_v18 }
 0x5e6   : > { %v2501_v12 = vpop.f32.mrf.mxu0 }
 0x5e7   : > { %v2508_v33 = vadd.f32 %v3251_v28, %v2501_v12 }
 0x5e8   : > { %v3109_v34 = vpop.f32.mrf.mxu0 }
 0x5e9   : > { %v2512_v37 = vsel %vm617_vm1, %v2508_v33, 0.0 }
 0x5ea   : > { %2513 = vadd.xlane.f32.xlu1 %v2512_v37  ;;  %v2504_v20 = vpop.f32.mrf.mxu0 }
 0x5eb   : > { %v2509_v19 = vadd.f32 %v3252_v38, %v2504_v20 }
 0x5ec   : > { %v3110_v36 = vpop.f32.mrf.mxu0 }
 0x5ed   : > { %v2515_v40 = vsel %vm617_vm1, %v2509_v19, 0.0 }
 0x5ee   : > { %2516 = vadd.xlane.f32.xlu0 %v2515_v40 }
 0x673   : > { %v2514_v31 = vpop.xlane.xlu1 %2513 }
 0x674   : > { %v2519_v41 = vmul.f32 0.03125, %v2514_v31 }
 0x676   : > { %v2521_v32 = vsub.f32 %v2508_v33, %v2519_v41 }
 0x677   : > { %v2517_v39 = vpop.xlane.xlu0 %2516 }
 0x678   : > { %v2520_v44 = vmul.f32 0.03125, %v2517_v39  ;;  %v2523_v27 = vmul.f32 %v2521_v32, %v2521_v32 }
 0x67a   : > { %v2522_v45 = vsub.f32 %v2509_v19, %v2520_v44  ;;  %v2525_v46 = vsel %vm617_vm1, %v2523_v27, 0.0 }
 0x67b   : > { %2526 = vadd.xlane.f32.xlu0 %v2525_v46  ;;  %v2990_v46 = vld [vmem:[%s559_s12] ss:$0 sm:$0xff] }
 0x67c   : > { %v2524_v47 = vmul.f32 %v2522_v45, %v2522_v45 }
 0x67e   : > { %v2528_v48 = vsel %vm617_vm1, %v2524_v47, 0.0 }
 0x67f   : > { %2529 = vadd.xlane.f32.xlu1 %v2528_v48  ;;  %v2991_v48 = vld [vmem:[%s562_s14] ss:$0 sm:$0xff] }
 0x704   : > { %v2527_v8 = vpop.xlane.xlu0 %2526 }
 0x705   : > { %v2531_v9 = vmul.f32 0.03125, %v2527_v8 }
 0x707   : > { %v2533_v21 = vadd.f32 1e-05, %v2531_v9 }
 0x708   : > { %v2530_v22 = vpop.xlane.xlu1 %2529 }
 0x709   : > { %3243 = vrsqrt.f32 %v2533_v21  ;;  %v2532_v51 = vmul.f32 0.03125, %v2530_v22 }
 0x70b   : > { %v2534_v52 = vadd.f32 1e-05, %v2532_v51 }
 0x70d   : > { %3245 = vrsqrt.f32 %v2534_v52 }
 0x716   : > { %v3244_v42 = vpop.eup %3243 }
 0x717   : > { %v2537_v43 = vmul.f32 %v3244_v42, %v2521_v32 }
 0x719   : > { %v2545_v16 = vmul.f32 %v2978_v53, %v2537_v43 }
 0x71a   : > { %v3246_v54 = vpop.eup %3245 }
 0x71b   : > { %v2538_v55 = vmul.f32 %v3246_v54, %v2522_v45  ;;  %v2553_v57 = vadd.f32 %v2979_v56, %v2545_v16 }
 0x71d   : > { %v2546_v29 = vmul.f32 %v2978_v53, %v2538_v55 }
 0x71f   : > { %v2554_v58 = vadd.f32 %v2979_v56, %v2546_v29 }
 0x721   : > { %v2555_v60 = vpack.c.bf16 %v2554_v58, %v2553_v57 }
 0x723   : > { %3116 = vmatmul.mubr.msk.bf16.vlgmr.msra.gmra.mxu1 %vm617_vm1, %v2555_v60 }
 0x724   : > { %3120 = vmatpush3.bf16.msra.mxu1 %v3207_v59  ;;  %3127 = vmatprep.mubr.msk.bf16.mxu1 %vm3325_vm2, %v3324_v15 }
 0x725   : > { %3121 = vmatprep.subr.bf16.mxu1 %v3324_v15 }
 0x728   : > { %3122 = vmatpush3.bf16.msra.mxu1 %v3208_v61 }
 0x729   : > { %3123 = vmatprep.subr.bf16.mxu1 %v3324_v15 }
 0x72c   : > { %3124 = vmatpush3.bf16.msra.mxu1 %v3209_v62 }
 0x72d   : > { %3125 = vmatprep.subr.bf16.mxu1 %v3324_v15  ;;  %v2984_v15 = vld [vmem:[%s556_s24] ss:$0 sm:$0xff] }
 0x730   : > { %3126 = vmatpush3.bf16.msra.mxu1 %v3210_v63 }
 0x7e3   : > { %v2616_v1 = vpop.f32.mrf.mxu1 }
 0x7e4   : > { %v2617_v3 = vadd.f32 %v2980_v0, %v2616_v1 }
 0x7e5   : > { %v3117_v2 = vpop.f32.mrf.mxu1 }
 0x7e6   : > { %v2623_v6 = vmax.f32 %v2617_v3, 0.0 }
 0x7e7   : > { %v2619_v4 = vpop.f32.mrf.mxu1 }
 0x7e8   : > { %v2620_v35 = vadd.f32 %v2980_v0, %v2619_v4 }
 0x7e9   : > { %v3118_v5 = vpop.f32.mrf.mxu1 }
 0x7ea   : > { %v2624_v7 = vmax.f32 %v2620_v35, 0.0 }
 0x7ec   : > { %v2625_v11 = vpack.c.bf16 %v2624_v7, %v2623_v6 }
 0x7ee   : > { %3128 = vmatmul.mubr.msk.bf16.vlgmr.msra.gmra.mxu1 %vm2396_vm8, %v2625_v11 }
 0x8ae   : > { %v2702_v17 = vpop.f32.mrf.mxu1 }
 0x8af   : > { %v2703_v13 = vadd.f32 %v2984_v15, %v2702_v17 }
 0x8b0   : > { %v3129_v14 = vpop.f32.mrf.mxu1 }
 0x8b1   : > { %v2709_v10 = vadd.f32 %v2703_v13, %v2553_v57 }
 0x8b2   : > { %v2705_v23 = vpop.f32.mrf.mxu1 }
 0x8b3   : > { %v2706_v24 = vadd.f32 %v2984_v15, %v2705_v23  ;;  %v2713_v25 = vsel %vm617_vm1, %v2709_v10, 0.0 }
 0x8b4   : > { %2714 = vadd.xlane.f32.xlu0 %v2713_v25  ;;  %v3130_v30 = vpop.f32.mrf.mxu1 }
 0x8b5   : > { %v2710_v26 = vadd.f32 %v2706_v24, %v2554_v58 }
 0x8b7   : > { %v2716_v18 = vsel %vm617_vm1, %v2710_v26, 0.0 }
 0x8b8   : > { %2717 = vadd.xlane.f32.xlu1 %v2716_v18 }
 0x93d   : > { %v2715_v12 = vpop.xlane.xlu0 %2714 }
 0x93e   : > { %v2719_v28 = vmul.f32 0.03125, %v2715_v12 }
 0x940   : > { %v2721_v33 = vsub.f32 %v2709_v10, %v2719_v28 }
 0x941   : > { %v2718_v34 = vpop.xlane.xlu1 %2717 }
 0x942   : > { %v2720_v37 = vmul.f32 0.03125, %v2718_v34  ;;  %v2723_v20 = vmul.f32 %v2721_v33, %v2721_v33 }
 0x944   : > { %v2722_v38 = vsub.f32 %v2710_v26, %v2720_v37  ;;  %v2725_v19 = vsel %vm617_vm1, %v2723_v20, 0.0 }
 0x945   : > { %2726 = vadd.xlane.f32.xlu0 %v2725_v19 }
 0x946   : > { %v2724_v36 = vmul.f32 %v2722_v38, %v2722_v38 }
 0x948   : > { %v2728_v40 = vsel %vm617_vm1, %v2724_v36, 0.0 }
 0x949   : > { %2729 = vadd.xlane.f32.xlu1 %v2728_v40 }
 0x9ce   : > { %v2727_v31 = vpop.xlane.xlu0 %2726 }
 0x9cf   : > { %v2731_v41 = vmul.f32 0.03125, %v2727_v31 }
 0x9d1   : > { %v2733_v32 = vadd.f32 1e-05, %v2731_v41 }
 0x9d2   : > { %v2730_v39 = vpop.xlane.xlu1 %2729 }
 0x9d3   : > { %3247 = vrsqrt.f32 %v2733_v32  ;;  %v2732_v44 = vmul.f32 0.03125, %v2730_v39 }
 0x9d5   : > { %v2734_v27 = vadd.f32 1e-05, %v2732_v44 }
 0x9d7   : > { %3249 = vrsqrt.f32 %v2734_v27 }
 0x9e0   : > { %v3248_v45 = vpop.eup %3247 }
 0x9e1   : > { %v2737_v47 = vmul.f32 %v3248_v45, %v2721_v33 }
 0x9e3   : > { %v2745_v49 = vmul.f32 %v2990_v46, %v2737_v47 }
 0x9e4   : > { %v3250_v50 = vpop.eup %3249 }
 0x9e5   : > { %v2738_v8 = vmul.f32 %v3250_v50, %v2722_v38  ;;  %v2753_v9 = vadd.f32 %v2991_v48, %v2745_v49 }
 0x9e7   : > { %v2746_v21 = vmul.f32 %v2990_v46, %v2738_v8  ;;  %2755 = vst.msk [vmem:[#allocation4] sm:$0xff] %vm617_vm1, %v2753_v9 }
 0x9e9   : > { %v2754_v22 = vadd.f32 %v2991_v48, %v2746_v21 }
 0x9eb   : > { %2756 = vst.msk [vmem:[#allocation4 + $0x8] sm:$0xff] %vm617_vm1, %v2754_v22 }
 0x9ec   : > { %3278 = shalt.err (!%p3275_p4)
}
 0x9ed   : > { %s3329_s12 = smov 128   ;;  %s3330_s14 = smov 8  }
 0x9ee   : > { %s3957_s27 = sld [smem:[#allocation11_spill]] }
 0x9f4   : > { %3133 = dma.vmem_to_hbm [thread:$0]  (%p3904_p11), %s2767_s21, 256, %s3957_s27, [#allocation5], %s3329_s12, %s3329_s12, %s3330_s14  }
 0x9f5   : > { %3304 = dma.done.wait (%p3904_p11), [#allocation5], 256  }
 0x9f6   : > { %3306 = vsyncadd (%p3904_p11), [#allocation5], 4294967040 }
 0x9f7 PF: > { %s29_s28 = sadd.s32 1, %s3317_s28   ;;  %s3958_s26 = sld [smem:[#allocation8_spill]] }
 0x9f8   : > { %p26_p5 = scmp.ge.s32.totalorder %s29_s28, 4   ;;  %s3959_s27 = sld [smem:[#allocation9_spill]] }
 0x9fa   :  { %28 = sbr.rel (!%p26_p5) target bundleno = 18 (0x12), region = 126 }
 0x9ff   :  { %2782 = vsyncpa [#allocation5], 1 }
 0xa00   :  { %2784 = vsyncpa [#allocation5 + $0x1], 1 }

</bundles_post_ra>
